<compile_context>
chip_gen: v7x
topology: tpu7x:2x2x1
jax: 0.10.0
libtpu: 0.0.40
codegen_flags: <defaults>
</compile_context>

<pallas_src>
import functools
import math

import jax
import jax.numpy as jnp
from jax.experimental import pallas as pl
from jax.experimental.pallas import tpu as pltpu

# ---- model hyperparameters (match the module's globals) ---------------------
D_MODEL = 128
D_K = D_V = 64
N_HEADS = 4
D_FF = 1024
N_LAYERS = 2

LN_EPS = 1e-6
NEG_INF = -1e30


def _layer_norm(x, gamma, beta, eps=LN_EPS):
    # x: (..., D); gamma/beta: (1, D); biased variance like torch.nn.LayerNorm
    mean = jnp.mean(x, axis=-1, keepdims=True)
    var = jnp.mean((x - mean) ** 2, axis=-1, keepdims=True)
    return (x - mean) * jax.lax.rsqrt(var + eps) * gamma + beta


# =============================== fused kernel ================================

def fused_decoder_kernel(x_sel_ref, w_emb_ref, b_emb_ref, attn_bias_ref,
                         pool_ref, wqkv_ref, wo_ref, g1_ref, b1_ref, w1_ref,
                         w2_ref, g2_ref, b2_ref, w_cls_ref, b_cls_ref,
                         out_ref, h_ref, *, n_heads, d_k, d_v):
    f32 = jnp.float32
    cd = jnp.bfloat16                      # matmul operand dtype (f32 accum)
    H, DK, DV = n_heads, d_k, d_v
    layer = pl.program_id(0)
    n_layers = pl.num_programs(0)
    inv_scale = float(1.0 / math.sqrt(DK))

    # ---- embedding (first grid step only): one lane-dense matmul -------------
    @pl.when(layer == 0)
    def _():
        h0 = jnp.dot(x_sel_ref[...].astype(cd), w_emb_ref[...],
                     preferred_element_type=f32) + b_emb_ref[...]
        h_ref[...] = h0                                     # (BS, D) f32

    h = h_ref[...]                         # activation carried across layers
    hb = h.astype(cd)                      # cast once per layer

    # ---- fused QKV projection: (BS, 128) @ (128, 768) ------------------------
    qkv = jnp.dot(hb, wqkv_ref[...], preferred_element_type=f32)
    qkvb = qkv.astype(cd)                  # single cast, heads peel off below

    def split_heads(base, width):
        return jnp.stack(
            [qkvb[:, base + hh * width:base + (hh + 1) * width]
             for hh in range(H)], axis=0)                   # (H, BS, width)

    q_h = split_heads(0, DK)
    k_h = split_heads(H * DK, DK)
    v_h = split_heads(2 * H * DK, DV)

    # ---- block-diagonal self-attention over the folded BS dim ----------------
    scores = jnp.einsum('hqd,hkd->hqk', q_h, k_h,
                        preferred_element_type=f32) * inv_scale
    scores = scores + attn_bias_ref[...]          # -1e30 on cross-batch pairs
    scores = scores - jnp.max(scores, axis=-1, keepdims=True)
    ex = jnp.exp(scores)
    probs = ex * pl.reciprocal(jnp.sum(ex, axis=-1, keepdims=True), approx=True)
    ctx = jnp.einsum('hqk,hkd->hqd', probs.astype(cd), v_h,
                     preferred_element_type=f32)            # (H, BS, DV)

    # ---- output projection: per-head MXU matmuls accumulated in f32 ----------
    proj = jnp.einsum('hqd,hdn->hqn', ctx.astype(cd), wo_ref[...],
                      preferred_element_type=f32)           # (H, BS, D)
    attn_out = jnp.sum(proj, axis=0)                        # (BS, D)

    h1 = _layer_norm(attn_out + h, g1_ref[...], b1_ref[...])

    # ---- position-wise FFN ----------------------------------------------------
    ff = jnp.dot(h1.astype(cd), w1_ref[...], preferred_element_type=f32)
    ff = jnp.maximum(ff, 0.0)
    ff = jnp.dot(ff.astype(cd), w2_ref[...], preferred_element_type=f32)
    h2 = _layer_norm(ff + h1, g2_ref[...], b2_ref[...])
    h_ref[...] = h2

    # ---- avg-pool + classifier + softmax (last grid step only) ---------------
    @pl.when(layer == n_layers - 1)
    def _():
        pooled = jnp.dot(pool_ref[...], h2,
                         preferred_element_type=f32)        # (B, D), one MXU op
        logits = jnp.dot(pooled.astype(cd), w_cls_ref[...],
                         preferred_element_type=f32) + b_cls_ref[...]
        # padded classes carry a -1e30 bias -> exp underflows to exactly 0
        logits = logits - jnp.max(logits, axis=-1, keepdims=True)
        e = jnp.exp(logits)
        out_ref[...] = e / jnp.sum(e, axis=-1, keepdims=True)   # exact softmax


# =============================== wrapper =====================================

def _fixed_spec(a):
    zeros = (0,) * a.ndim
    return pl.BlockSpec(a.shape, lambda l, _z=zeros: _z)


def _layer_spec(a):
    zeros = (0,) * (a.ndim - 1)
    return pl.BlockSpec((None,) + a.shape[1:], lambda l, _z=zeros: (l,) + _z)


def decoder_forward(x, params, n_class):
    """x: [B, S] float32  ->  [B, n_class] softmax probabilities."""
    (w_emb_r, b_emb_r), stacked, (w_cls_pad, b_cls_pad) = params
    (wqkv, wo, g1, b1, w1, w2, g2, b2) = stacked
    B, S = x.shape
    BS = B * S
    D = w_emb_r.shape[-1]
    L = wqkv.shape[0]
    c_pad = w_cls_pad.shape[-1]

    # --- wrapper-side layout plumbing (tiny XLA ops on (B,S)-sized data) ------
    # x_sel[(b,s), (s',i)] = x[b,i] * (s==s')  => embedding is one dense matmul
    eye = jnp.eye(S, dtype=x.dtype)
    x_sel = (x[:, None, None, :] * eye[None, :, :, None]).reshape(BS, S * S)
    b_emb_full = jnp.tile(b_emb_r, (B, 1))                          # (BS, D)
    blk = jnp.arange(BS) // S
    attn_bias = jnp.where(blk[:, None] == blk[None, :],
                          0.0, NEG_INF).astype(jnp.float32)         # (BS, BS)
    pool_mat = jnp.where(jnp.arange(B)[:, None] == blk[None, :],
                         1.0 / S, 0.0).astype(jnp.float32)          # (B, BS)

    kernel = functools.partial(fused_decoder_kernel,
                               n_heads=N_HEADS, d_k=D_K, d_v=D_V)

    fixed_in = [x_sel, w_emb_r, b_emb_full, attn_bias, pool_mat]
    layer_in = [wqkv, wo, g1, b1, w1, w2, g2, b2]
    tail_in = [w_cls_pad, b_cls_pad]

    in_specs = ([_fixed_spec(a) for a in fixed_in]
                + [_layer_spec(a) for a in layer_in]
                + [_fixed_spec(a) for a in tail_in])

    out_padded = pl.pallas_call(
        kernel,
        out_shape=jax.ShapeDtypeStruct((B, c_pad), jnp.float32),
        grid=(L,),                                   # layers stream over grid
        in_specs=in_specs,
        out_specs=pl.BlockSpec((B, c_pad), lambda l: (0, 0)),
        scratch_shapes=[pltpu.VMEM((BS, D), jnp.float32)],  # carried activation
        compiler_params=pltpu.CompilerParams(
            dimension_semantics=("arbitrary",)),
    )(*fixed_in, *layer_in, *tail_in)
    return out_padded[:, :n_class]


# ============================ parameter init =================================

def init_params(key, seq_size, n_class):
    D, H, DK, DV, DFF, L = D_MODEL, N_HEADS, D_K, D_V, D_FF, N_LAYERS
    c_pad = max(128, ((n_class + 127) // 128) * 128)

    def dense(k, shape, scale=0.05, dtype=jnp.bfloat16):
        return (scale * jax.random.normal(k, shape, jnp.float32)).astype(dtype)

    keys = iter(jax.random.split(key, 4 * L + 4))

    # Conv1d(seq, seq*d_model, 1) stored as ((s, i) -> d) so the kernel does a
    # single (BS, S*S) @ (S*S, D) matmul; bias stored as (S, D).
    w_emb_r = dense(next(keys), (seq_size * seq_size, D))
    b_emb_r = dense(next(keys), (seq_size, D), dtype=jnp.float32)

    wqkv, wo, g1, b1, w1, w2, g2, b2 = ([] for _ in range(8))
    for _ in range(L):
        wqkv.append(dense(next(keys), (D, 3 * H * DK)))  # [Q heads|K heads|V heads]
        wo.append(dense(next(keys), (H, DV, D)))         # per-head output proj
        g1.append(jnp.ones((1, D), jnp.float32))
        b1.append(jnp.zeros((1, D), jnp.float32))
        w1.append(dense(next(keys), (D, DFF)))
        w2.append(dense(next(keys), (DFF, D)))
        g2.append(jnp.ones((1, D), jnp.float32))
        b2.append(jnp.zeros((1, D), jnp.float32))
    stacked = tuple(jnp.stack(p) for p in (wqkv, wo, g1, b1, w1, w2, g2, b2))

    # classifier: Linear(d_model, n_class) + Softmax(dim=1), lane-padded to 128;
    # padded columns get zero weight and -1e30 bias (so softmax ignores them).
    w_cls = dense(next(keys), (D, n_class), dtype=jnp.float32)
    b_cls = dense(next(keys), (1, n_class), dtype=jnp.float32)
    w_cls_pad = jnp.zeros((D, c_pad), jnp.bfloat16).at[:, :n_class].set(
        w_cls.astype(jnp.bfloat16))
    b_cls_pad = jnp.full((1, c_pad), NEG_INF, jnp.float32).at[:, :n_class].set(b_cls)

    return (w_emb_r, b_emb_r), stacked, (w_cls_pad, b_cls_pad)


# ============================ pure-JAX reference =============================

def reference_forward(x, params, n_class):
    (w_emb_r, b_emb_r), stacked, (w_cls_pad, b_cls_pad) = params
    (wqkv, wo, g1, b1, w1, w2, g2, b2) = stacked
    f32 = jnp.float32
    B, S = x.shape
    D = w_emb_r.shape[-1]
    H, DK, DV = N_HEADS, D_K, D_V
    L = wqkv.shape[0]

    w_emb3 = w_emb_r.astype(f32).reshape(S, S, D)            # [s, i, d]
    h = jnp.einsum('bi,sid->bsd', x, w_emb3) + b_emb_r[None].astype(f32)

    for l in range(L):
        qkv = h @ wqkv[l].astype(f32)                        # (B, S, 3*H*DK)
        q = qkv[..., :H * DK].reshape(B, S, H, DK).transpose(0, 2, 1, 3)
        k = qkv[..., H * DK:2 * H * DK].reshape(B, S, H, DK).transpose(0, 2, 1, 3)
        v = qkv[..., 2 * H * DK:].reshape(B, S, H, DV).transpose(0, 2, 1, 3)
        scores = (q @ k.transpose(0, 1, 3, 2)) / math.sqrt(DK)
        attn = jax.nn.softmax(scores, axis=-1)
        ctx = attn @ v                                       # (B, H, S, DV)
        attn_out = jnp.einsum('bhsd,hdn->bsn', ctx, wo[l].astype(f32))
        h = _layer_norm(attn_out + h, g1[l], b1[l])
        ff = jnp.maximum(h @ w1[l].astype(f32), 0.0) @ w2[l].astype(f32)
        h = _layer_norm(ff + h, g2[l], b2[l])

    pooled = jnp.mean(h, axis=1)                             # (B, D)
    logits = pooled @ w_cls_pad.astype(f32) + b_cls_pad
    return jax.nn.softmax(logits, axis=-1)[:, :n_class]


# ================================= main ======================================

if __name__ == "__main__":
    B, SEQ, N_CLASS = 2, 8, 16

    key = jax.random.PRNGKey(0)
    k_x, k_p = jax.random.split(key)
    x = jax.random.normal(k_x, (B, SEQ), dtype=jnp.float32)   # [batch, tgt_len]
    params = init_params(k_p, SEQ, N_CLASS)

    fwd = jax.jit(functools.partial(decoder_forward, n_class=N_CLASS))
    out = jax.block_until_ready(fwd(x, params))
    ref = reference_forward(x, params, N_CLASS)

    assert out.shape == (B, N_CLASS), out.shape
    assert bool(jnp.all(jnp.isfinite(out)))
    # rows of a softmax must sum to 1
    assert bool(jnp.allclose(jnp.sum(out, axis=1), 1.0, atol=1e-3))
    # bf16 matmul operands + approx softmax reciprocal => bf16-level tolerance
    assert bool(jnp.allclose(out, ref, atol=3e-2, rtol=3e-2)), \
        float(jnp.max(jnp.abs(out - ref)))
    print("KERNEL_OK")
</pallas_src>

<mosaic_0001>
module attributes {stable_mosaic.version = 11 : i64} {
  func.func @fused_decoder_kernel(%arg0: i32, %arg1: memref<16x64xf32, #tpu.memory_space<vmem>>, %arg2: memref<64x128xbf16, #tpu.memory_space<vmem>>, %arg3: memref<16x128xf32, #tpu.memory_space<vmem>>, %arg4: memref<16x16xf32, #tpu.memory_space<vmem>>, %arg5: memref<2x16xf32, #tpu.memory_space<vmem>>, %arg6: memref<1x128x768xbf16, #tpu.memory_space<vmem>>, %arg7: memref<1x4x64x128xbf16, #tpu.memory_space<vmem>>, %arg8: memref<1x1x128xf32, #tpu.memory_space<vmem>>, %arg9: memref<1x1x128xf32, #tpu.memory_space<vmem>>, %arg10: memref<1x128x1024xbf16, #tpu.memory_space<vmem>>, %arg11: memref<1x1024x128xbf16, #tpu.memory_space<vmem>>, %arg12: memref<1x1x128xf32, #tpu.memory_space<vmem>>, %arg13: memref<1x1x128xf32, #tpu.memory_space<vmem>>, %arg14: memref<128x128xbf16, #tpu.memory_space<vmem>>, %arg15: memref<1x128xf32, #tpu.memory_space<vmem>>, %arg16: memref<2x128xf32, #tpu.memory_space<vmem>>, %arg17: memref<16x128xf32, #tpu.memory_space<vmem>>) attributes {dimension_semantics = [#tpu.dimension_semantics<arbitrary>], iteration_bounds = array<i64: 2>, scalar_prefetch = 0 : i64, scratch_operands = 1 : i64, tpu.core_type = #tpu.core_type<tc>, window_params = [{pipeline_mode = #tpu.pipeline_mode<synchronous>, transform_indices = @transform_0, window_bounds = array<i64: 16, 64>}, {pipeline_mode = #tpu.pipeline_mode<synchronous>, transform_indices = @transform_1, window_bounds = array<i64: 64, 128>}, {pipeline_mode = #tpu.pipeline_mode<synchronous>, transform_indices = @transform_2, window_bounds = array<i64: 16, 128>}, {pipeline_mode = #tpu.pipeline_mode<synchronous>, transform_indices = @transform_3, window_bounds = array<i64: 16, 16>}, {pipeline_mode = #tpu.pipeline_mode<synchronous>, transform_indices = @transform_4, window_bounds = array<i64: 2, 16>}, {transform_indices = @transform_5, window_bounds = array<i64: 1, 128, 768>}, {transform_indices = @transform_6, window_bounds = array<i64: 1, 4, 64, 128>}, {transform_indices = @transform_7, window_bounds = array<i64: 1, 1, 128>}, {transform_indices = @transform_8, window_bounds = array<i64: 1, 1, 128>}, {transform_indices = @transform_9, window_bounds = array<i64: 1, 128, 1024>}, {transform_indices = @transform_10, window_bounds = array<i64: 1, 1024, 128>}, {transform_indices = @transform_11, window_bounds = array<i64: 1, 1, 128>}, {transform_indices = @transform_12, window_bounds = array<i64: 1, 1, 128>}, {pipeline_mode = #tpu.pipeline_mode<synchronous>, transform_indices = @transform_13, window_bounds = array<i64: 128, 128>}, {pipeline_mode = #tpu.pipeline_mode<synchronous>, transform_indices = @transform_14, window_bounds = array<i64: 1, 128>}, {pipeline_mode = #tpu.pipeline_mode<synchronous>, transform_indices = @transform_15, window_bounds = array<i64: 2, 128>}]} {
    %c0_i32 = arith.constant 0 : i32
    %0 = arith.cmpi eq, %arg0, %c0_i32 : i32
    %1 = arith.extui %0 : i1 to i32
    %c0_i32_0 = arith.constant 0 : i32
    %2 = arith.cmpi ne, %1, %c0_i32_0 : i32
    scf.if %2 {
      %c0_52 = arith.constant 0 : index
      %c0_53 = arith.constant 0 : index
      %128 = vector.load %arg1[%c0_52, %c0_53] : memref<16x64xf32, #tpu.memory_space<vmem>>, vector<16x64xf32>
      %129 = arith.truncf %128 : vector<16x64xf32> to vector<16x64xbf16>
      %c0_54 = arith.constant 0 : index
      %c0_55 = arith.constant 0 : index
      %130 = vector.load %arg2[%c0_54, %c0_55] : memref<64x128xbf16, #tpu.memory_space<vmem>>, vector<64x128xbf16>
      %cst_56 = arith.constant dense<0.000000e+00> : vector<16x128xf32>
      %131 = tpu.matmul %129, %130, %cst_56 {dimension_numbers = #tpu.dot_dimension_numbers<[1], [0], [0], [1], [0, 0, 1, 1], [], []>} : vector<16x64xbf16>, vector<64x128xbf16>, vector<16x128xf32> -> vector<16x128xf32>
      %c0_57 = arith.constant 0 : index
      %c0_58 = arith.constant 0 : index
      %132 = vector.load %arg3[%c0_57, %c0_58] : memref<16x128xf32, #tpu.memory_space<vmem>>, vector<16x128xf32>
      %133 = arith.addf %131, %132 : vector<16x128xf32>
      %c0_59 = arith.constant 0 : index
      %c0_60 = arith.constant 0 : index
      %134 = vector.load %arg17[%c0_59, %c0_60] : memref<16x128xf32, #tpu.memory_space<vmem>>, vector<16x128xf32>
      tpu.vector_store %arg17[%c0_59, %c0_60], %133 {strides = array<i32>} : memref<16x128xf32, #tpu.memory_space<vmem>>, vector<16x128xf32>,
    } else {
    }
    %c0 = arith.constant 0 : index
    %c0_1 = arith.constant 0 : index
    %3 = vector.load %arg17[%c0, %c0_1] : memref<16x128xf32, #tpu.memory_space<vmem>>, vector<16x128xf32>
    %4 = arith.truncf %3 : vector<16x128xf32> to vector<16x128xbf16>
    %c0_2 = arith.constant 0 : index
    %c0_3 = arith.constant 0 : index
    %c0_4 = arith.constant 0 : index
    %5 = vector.load %arg6[%c0_2, %c0_3, %c0_4] : memref<1x128x768xbf16, #tpu.memory_space<vmem>>, vector<1x128x768xbf16>
    %6 = vector.shape_cast %5 : vector<1x128x768xbf16> to vector<128x768xbf16>
    %cst = arith.constant dense<0.000000e+00> : vector<16x768xf32>
    %7 = tpu.matmul %4, %6, %cst {dimension_numbers = #tpu.dot_dimension_numbers<[1], [0], [0], [1], [0, 0, 1, 1], [], []>} : vector<16x128xbf16>, vector<128x768xbf16>, vector<16x768xf32> -> vector<16x768xf32>
    %8 = arith.truncf %7 : vector<16x768xf32> to vector<16x768xbf16>
    %9 = vector.extract_strided_slice %8 {offsets = [0, 0], sizes = [16, 64], strides = [1, 1]} : vector<16x768xbf16> to vector<16x64xbf16>
    %10 = vector.extract_strided_slice %8 {offsets = [0, 64], sizes = [16, 64], strides = [1, 1]} : vector<16x768xbf16> to vector<16x64xbf16>
    %11 = vector.extract_strided_slice %8 {offsets = [0, 128], sizes = [16, 64], strides = [1, 1]} : vector<16x768xbf16> to vector<16x64xbf16>
    %12 = vector.extract_strided_slice %8 {offsets = [0, 192], sizes = [16, 64], strides = [1, 1]} : vector<16x768xbf16> to vector<16x64xbf16>
    %13 = vector.shape_cast %9 : vector<16x64xbf16> to vector<1x16x64xbf16>
    %14 = vector.shape_cast %10 : vector<16x64xbf16> to vector<1x16x64xbf16>
    %15 = vector.shape_cast %11 : vector<16x64xbf16> to vector<1x16x64xbf16>
    %16 = vector.shape_cast %12 : vector<16x64xbf16> to vector<1x16x64xbf16>
    %17 = tpu.concatenate %13, %14, %15, %16 in 0 : vector<1x16x64xbf16>, vector<1x16x64xbf16>, vector<1x16x64xbf16>, vector<1x16x64xbf16> -> vector<4x16x64xbf16>
    %18 = vector.extract_strided_slice %8 {offsets = [0, 256], sizes = [16, 64], strides = [1, 1]} : vector<16x768xbf16> to vector<16x64xbf16>
    %19 = vector.extract_strided_slice %8 {offsets = [0, 320], sizes = [16, 64], strides = [1, 1]} : vector<16x768xbf16> to vector<16x64xbf16>
    %20 = vector.extract_strided_slice %8 {offsets = [0, 384], sizes = [16, 64], strides = [1, 1]} : vector<16x768xbf16> to vector<16x64xbf16>
    %21 = vector.extract_strided_slice %8 {offsets = [0, 448], sizes = [16, 64], strides = [1, 1]} : vector<16x768xbf16> to vector<16x64xbf16>
    %22 = vector.shape_cast %18 : vector<16x64xbf16> to vector<1x16x64xbf16>
    %23 = vector.shape_cast %19 : vector<16x64xbf16> to vector<1x16x64xbf16>
    %24 = vector.shape_cast %20 : vector<16x64xbf16> to vector<1x16x64xbf16>
    %25 = vector.shape_cast %21 : vector<16x64xbf16> to vector<1x16x64xbf16>
    %26 = tpu.concatenate %22, %23, %24, %25 in 0 : vector<1x16x64xbf16>, vector<1x16x64xbf16>, vector<1x16x64xbf16>, vector<1x16x64xbf16> -> vector<4x16x64xbf16>
    %27 = vector.extract_strided_slice %8 {offsets = [0, 512], sizes = [16, 64], strides = [1, 1]} : vector<16x768xbf16> to vector<16x64xbf16>
    %28 = vector.extract_strided_slice %8 {offsets = [0, 576], sizes = [16, 64], strides = [1, 1]} : vector<16x768xbf16> to vector<16x64xbf16>
    %29 = vector.extract_strided_slice %8 {offsets = [0, 640], sizes = [16, 64], strides = [1, 1]} : vector<16x768xbf16> to vector<16x64xbf16>
    %30 = vector.extract_strided_slice %8 {offsets = [0, 704], sizes = [16, 64], strides = [1, 1]} : vector<16x768xbf16> to vector<16x64xbf16>
    %31 = vector.shape_cast %27 : vector<16x64xbf16> to vector<1x16x64xbf16>
    %32 = vector.shape_cast %28 : vector<16x64xbf16> to vector<1x16x64xbf16>
    %33 = vector.shape_cast %29 : vector<16x64xbf16> to vector<1x16x64xbf16>
    %34 = vector.shape_cast %30 : vector<16x64xbf16> to vector<1x16x64xbf16>
    %35 = tpu.concatenate %31, %32, %33, %34 in 0 : vector<1x16x64xbf16>, vector<1x16x64xbf16>, vector<1x16x64xbf16>, vector<1x16x64xbf16> -> vector<4x16x64xbf16>
    "tpu.trace_start"() <{level = 10 : i32, message = "hqd,hkd->hqk"}> : () -> ()
    %cst_5 = arith.constant dense<0.000000e+00> : vector<4x16x16xf32>
    %36 = tpu.matmul %17, %26, %cst_5 {dimension_numbers = #tpu.dot_dimension_numbers<[2], [2], [1], [1], [0, 0, 0, 1, 1, 1], [0], [0]>} : vector<4x16x64xbf16>, vector<4x16x64xbf16>, vector<4x16x16xf32> -> vector<4x16x16xf32>
    "tpu.trace_stop"() : () -> ()
    %cst_6 = arith.constant 1.250000e-01 : f32
    %37 = vector.broadcast %cst_6 : f32 to vector<4x16x16xf32>
    %38 = arith.mulf %36, %37 : vector<4x16x16xf32>
    %c0_7 = arith.constant 0 : index
    %c0_8 = arith.constant 0 : index
    %39 = vector.load %arg4[%c0_7, %c0_8] : memref<16x16xf32, #tpu.memory_space<vmem>>, vector<16x16xf32>
    %40 = vector.shape_cast %39 : vector<16x16xf32> to vector<1x16x16xf32>
    %41 = vector.broadcast %40 : vector<1x16x16xf32> to vector<4x16x16xf32>
    %42 = arith.addf %38, %41 : vector<4x16x16xf32>
    %cst_9 = arith.constant dense<0xFF800000> : vector<4x16xf32>
    %43 = vector.multi_reduction <maximumf>, %42, %cst_9 [2] : vector<4x16x16xf32> to vector<4x16xf32>
    %44 = vector.shape_cast %43 : vector<4x16xf32> to vector<4x16x1xf32>
    %45 = vector.broadcast %44 : vector<4x16x1xf32> to vector<4x16x16xf32>
    %46 = arith.subf %42, %45 : vector<4x16x16xf32>
    %47 = math.exp %46 : vector<4x16x16xf32>
    %cst_10 = arith.constant dense<0.000000e+00> : vector<4x16xf32>
    %48 = vector.multi_reduction <add>, %47, %cst_10 [2] : vector<4x16x16xf32> to vector<4x16xf32>
    %49 = vector.shape_cast %48 : vector<4x16xf32> to vector<4x16x1xf32>
    %50 = tpu.reciprocal %49 {approx = true} : vector<4x16x1xf32> -> vector<4x16x1xf32>
    %51 = vector.broadcast %50 : vector<4x16x1xf32> to vector<4x16x16xf32>
    %52 = arith.mulf %47, %51 : vector<4x16x16xf32>
    %53 = arith.truncf %52 : vector<4x16x16xf32> to vector<4x16x16xbf16>
    "tpu.trace_start"() <{level = 10 : i32, message = "hqk,hkd->hqd"}> : () -> ()
    %cst_11 = arith.constant dense<0.000000e+00> : vector<4x16x64xf32>
    %54 = tpu.matmul %53, %35, %cst_11 {dimension_numbers = #tpu.dot_dimension_numbers<[2], [1], [1], [2], [0, 0, 0, 1, 1, 2], [0], [0]>} : vector<4x16x16xbf16>, vector<4x16x64xbf16>, vector<4x16x64xf32> -> vector<4x16x64xf32>
    "tpu.trace_stop"() : () -> ()
    %55 = arith.truncf %54 : vector<4x16x64xf32> to vector<4x16x64xbf16>
    %c0_12 = arith.constant 0 : index
    %c0_13 = arith.constant 0 : index
    %c0_14 = arith.constant 0 : index
    %c0_15 = arith.constant 0 : index
    %56 = vector.load %arg7[%c0_12, %c0_13, %c0_14, %c0_15] : memref<1x4x64x128xbf16, #tpu.memory_space<vmem>>, vector<1x4x64x128xbf16>
    %57 = vector.shape_cast %56 : vector<1x4x64x128xbf16> to vector<4x64x128xbf16>
    "tpu.trace_start"() <{level = 10 : i32, message = "hqd,hdn->hqn"}> : () -> ()
    %cst_16 = arith.constant dense<0.000000e+00> : vector<4x16x128xf32>
    %58 = tpu.matmul %55, %57, %cst_16 {dimension_numbers = #tpu.dot_dimension_numbers<[2], [1], [1], [2], [0, 0, 0, 1, 1, 2], [0], [0]>} : vector<4x16x64xbf16>, vector<4x64x128xbf16>, vector<4x16x128xf32> -> vector<4x16x128xf32>
    "tpu.trace_stop"() : () -> ()
    %cst_17 = arith.constant dense<0.000000e+00> : vector<16x128xf32>
    %59 = vector.multi_reduction <add>, %58, %cst_17 [0] : vector<4x16x128xf32> to vector<16x128xf32>
    %60 = arith.addf %59, %3 : vector<16x128xf32>
    %c0_18 = arith.constant 0 : index
    %c0_19 = arith.constant 0 : index
    %c0_20 = arith.constant 0 : index
    %61 = vector.load %arg8[%c0_18, %c0_19, %c0_20] : memref<1x1x128xf32, #tpu.memory_space<vmem>>, vector<1x1x128xf32>
    %62 = vector.shape_cast %61 : vector<1x1x128xf32> to vector<1x128xf32>
    %c0_21 = arith.constant 0 : index
    %c0_22 = arith.constant 0 : index
    %c0_23 = arith.constant 0 : index
    %63 = vector.load %arg9[%c0_21, %c0_22, %c0_23] : memref<1x1x128xf32, #tpu.memory_space<vmem>>, vector<1x1x128xf32>
    %64 = vector.shape_cast %63 : vector<1x1x128xf32> to vector<1x128xf32>
    %cst_24 = arith.constant dense<0.000000e+00> : vector<16xf32>
    %65 = vector.multi_reduction <add>, %60, %cst_24 [1] : vector<16x128xf32> to vector<16xf32>
    %66 = vector.shape_cast %65 : vector<16xf32> to vector<16x1xf32>
    %cst_25 = arith.constant 1.280000e+02 : f32
    %67 = vector.broadcast %cst_25 : f32 to vector<16x1xf32>
    %68 = arith.divf %66, %67 : vector<16x1xf32>
    %69 = vector.broadcast %68 : vector<16x1xf32> to vector<16x128xf32>
    %70 = arith.subf %60, %69 : vector<16x128xf32>
    %71 = arith.mulf %70, %70 : vector<16x128xf32>
    %cst_26 = arith.constant dense<0.000000e+00> : vector<16xf32>
    %72 = vector.multi_reduction <add>, %71, %cst_26 [1] : vector<16x128xf32> to vector<16xf32>
    %73 = vector.shape_cast %72 : vector<16xf32> to vector<16x1xf32>
    %cst_27 = arith.constant 1.280000e+02 : f32
    %74 = vector.broadcast %cst_27 : f32 to vector<16x1xf32>
    %75 = arith.divf %73, %74 : vector<16x1xf32>
    %76 = vector.broadcast %68 : vector<16x1xf32> to vector<16x128xf32>
    %77 = arith.subf %60, %76 : vector<16x128xf32>
    %cst_28 = arith.constant 9.99999997E-7 : f32
    %78 = vector.broadcast %cst_28 : f32 to vector<16x1xf32>
    %79 = arith.addf %75, %78 : vector<16x1xf32>
    %80 = math.rsqrt %79 : vector<16x1xf32>
    %81 = vector.broadcast %80 : vector<16x1xf32> to vector<16x128xf32>
    %82 = arith.mulf %77, %81 : vector<16x128xf32>
    %83 = vector.broadcast %62 : vector<1x128xf32> to vector<16x128xf32>
    %84 = arith.mulf %82, %83 : vector<16x128xf32>
    %85 = vector.broadcast %64 : vector<1x128xf32> to vector<16x128xf32>
    %86 = arith.addf %84, %85 : vector<16x128xf32>
    %87 = arith.truncf %86 : vector<16x128xf32> to vector<16x128xbf16>
    %c0_29 = arith.constant 0 : index
    %c0_30 = arith.constant 0 : index
    %c0_31 = arith.constant 0 : index
    %88 = vector.load %arg10[%c0_29, %c0_30, %c0_31] : memref<1x128x1024xbf16, #tpu.memory_space<vmem>>, vector<1x128x1024xbf16>
    %89 = vector.shape_cast %88 : vector<1x128x1024xbf16> to vector<128x1024xbf16>
    %cst_32 = arith.constant dense<0.000000e+00> : vector<16x1024xf32>
    %90 = tpu.matmul %87, %89, %cst_32 {dimension_numbers = #tpu.dot_dimension_numbers<[1], [0], [0], [1], [0, 0, 1, 1], [], []>} : vector<16x128xbf16>, vector<128x1024xbf16>, vector<16x1024xf32> -> vector<16x1024xf32>
    %cst_33 = arith.constant 0.000000e+00 : f32
    %91 = vector.broadcast %cst_33 : f32 to vector<16x1024xf32>
    %92 = arith.maximumf %90, %91 : vector<16x1024xf32>
    %93 = arith.truncf %92 : vector<16x1024xf32> to vector<16x1024xbf16>
    %c0_34 = arith.constant 0 : index
    %c0_35 = arith.constant 0 : index
    %c0_36 = arith.constant 0 : index
    %94 = vector.load %arg11[%c0_34, %c0_35, %c0_36] : memref<1x1024x128xbf16, #tpu.memory_space<vmem>>, vector<1x1024x128xbf16>
    %95 = vector.shape_cast %94 : vector<1x1024x128xbf16> to vector<1024x128xbf16>
    %cst_37 = arith.constant dense<0.000000e+00> : vector<16x128xf32>
    %96 = tpu.matmul %93, %95, %cst_37 {dimension_numbers = #tpu.dot_dimension_numbers<[1], [0], [0], [1], [0, 0, 1, 1], [], []>} : vector<16x1024xbf16>, vector<1024x128xbf16>, vector<16x128xf32> -> vector<16x128xf32>
    %97 = arith.addf %96, %86 : vector<16x128xf32>
    %c0_38 = arith.constant 0 : index
    %c0_39 = arith.constant 0 : index
    %c0_40 = arith.constant 0 : index
    %98 = vector.load %arg12[%c0_38, %c0_39, %c0_40] : memref<1x1x128xf32, #tpu.memory_space<vmem>>, vector<1x1x128xf32>
    %99 = vector.shape_cast %98 : vector<1x1x128xf32> to vector<1x128xf32>
    %c0_41 = arith.constant 0 : index
    %c0_42 = arith.constant 0 : index
    %c0_43 = arith.constant 0 : index
    %100 = vector.load %arg13[%c0_41, %c0_42, %c0_43] : memref<1x1x128xf32, #tpu.memory_space<vmem>>, vector<1x1x128xf32>
    %101 = vector.shape_cast %100 : vector<1x1x128xf32> to vector<1x128xf32>
    %cst_44 = arith.constant dense<0.000000e+00> : vector<16xf32>
    %102 = vector.multi_reduction <add>, %97, %cst_44 [1] : vector<16x128xf32> to vector<16xf32>
    %103 = vector.shape_cast %102 : vector<16xf32> to vector<16x1xf32>
    %cst_45 = arith.constant 1.280000e+02 : f32
    %104 = vector.broadcast %cst_45 : f32 to vector<16x1xf32>
    %105 = arith.divf %103, %104 : vector<16x1xf32>
    %106 = vector.broadcast %105 : vector<16x1xf32> to vector<16x128xf32>
    %107 = arith.subf %97, %106 : vector<16x128xf32>
    %108 = arith.mulf %107, %107 : vector<16x128xf32>
    %cst_46 = arith.constant dense<0.000000e+00> : vector<16xf32>
    %109 = vector.multi_reduction <add>, %108, %cst_46 [1] : vector<16x128xf32> to vector<16xf32>
    %110 = vector.shape_cast %109 : vector<16xf32> to vector<16x1xf32>
    %cst_47 = arith.constant 1.280000e+02 : f32
    %111 = vector.broadcast %cst_47 : f32 to vector<16x1xf32>
    %112 = arith.divf %110, %111 : vector<16x1xf32>
    %113 = vector.broadcast %105 : vector<16x1xf32> to vector<16x128xf32>
    %114 = arith.subf %97, %113 : vector<16x128xf32>
    %cst_48 = arith.constant 9.99999997E-7 : f32
    %115 = vector.broadcast %cst_48 : f32 to vector<16x1xf32>
    %116 = arith.addf %112, %115 : vector<16x1xf32>
    %117 = math.rsqrt %116 : vector<16x1xf32>
    %118 = vector.broadcast %117 : vector<16x1xf32> to vector<16x128xf32>
    %119 = arith.mulf %114, %118 : vector<16x128xf32>
    %120 = vector.broadcast %99 : vector<1x128xf32> to vector<16x128xf32>
    %121 = arith.mulf %119, %120 : vector<16x128xf32>
    %122 = vector.broadcast %101 : vector<1x128xf32> to vector<16x128xf32>
    %123 = arith.addf %121, %122 : vector<16x128xf32>
    %c0_49 = arith.constant 0 : index
    %c0_50 = arith.constant 0 : index
    %124 = vector.load %arg17[%c0_49, %c0_50] : memref<16x128xf32, #tpu.memory_space<vmem>>, vector<16x128xf32>
    tpu.vector_store %arg17[%c0_49, %c0_50], %123 {strides = array<i32>} : memref<16x128xf32, #tpu.memory_space<vmem>>, vector<16x128xf32>,
    %c1_i32 = arith.constant 1 : i32
    %125 = arith.cmpi eq, %arg0, %c1_i32 : i32
    %126 = arith.extui %125 : i1 to i32
    %c0_i32_51 = arith.constant 0 : i32
    %127 = arith.cmpi ne, %126, %c0_i32_51 : i32
    scf.if %127 {
      %c0_52 = arith.constant 0 : index
      %c0_53 = arith.constant 0 : index
      %128 = vector.load %arg5[%c0_52, %c0_53] : memref<2x16xf32, #tpu.memory_space<vmem>>, vector<2x16xf32>
      %cst_54 = arith.constant dense<0.000000e+00> : vector<2x128xf32>
      %129 = tpu.matmul %128, %123, %cst_54 {dimension_numbers = #tpu.dot_dimension_numbers<[1], [0], [0], [1], [0, 0, 1, 1], [], []>} : vector<2x16xf32>, vector<16x128xf32>, vector<2x128xf32> -> vector<2x128xf32>
      %130 = arith.truncf %129 : vector<2x128xf32> to vector<2x128xbf16>
      %c0_55 = arith.constant 0 : index
      %c0_56 = arith.constant 0 : index
      %131 = vector.load %arg14[%c0_55, %c0_56] : memref<128x128xbf16, #tpu.memory_space<vmem>>, vector<128x128xbf16>
      %cst_57 = arith.constant dense<0.000000e+00> : vector<2x128xf32>
      %132 = tpu.matmul %130, %131, %cst_57 {dimension_numbers = #tpu.dot_dimension_numbers<[1], [0], [0], [1], [0, 0, 1, 1], [], []>} : vector<2x128xbf16>, vector<128x128xbf16>, vector<2x128xf32> -> vector<2x128xf32>
      %c0_58 = arith.constant 0 : index
      %c0_59 = arith.constant 0 : index
      %133 = vector.load %arg15[%c0_58, %c0_59] : memref<1x128xf32, #tpu.memory_space<vmem>>, vector<1x128xf32>
      %134 = vector.broadcast %133 : vector<1x128xf32> to vector<2x128xf32>
      %135 = arith.addf %132, %134 : vector<2x128xf32>
      %cst_60 = arith.constant dense<0xFF800000> : vector<2xf32>
      %136 = vector.multi_reduction <maximumf>, %135, %cst_60 [1] : vector<2x128xf32> to vector<2xf32>
      %137 = vector.shape_cast %136 : vector<2xf32> to vector<2x1xf32>
      %138 = vector.broadcast %137 : vector<2x1xf32> to vector<2x128xf32>
      %139 = arith.subf %135, %138 : vector<2x128xf32>
      %140 = math.exp %139 : vector<2x128xf32>
      %cst_61 = arith.constant dense<0.000000e+00> : vector<2xf32>
      %141 = vector.multi_reduction <add>, %140, %cst_61 [1] : vector<2x128xf32> to vector<2xf32>
      %142 = vector.shape_cast %141 : vector<2xf32> to vector<2x1xf32>
      %143 = vector.broadcast %142 : vector<2x1xf32> to vector<2x128xf32>
      %144 = arith.divf %140, %143 : vector<2x128xf32>
      %c0_62 = arith.constant 0 : index
      %c0_63 = arith.constant 0 : index
      %145 = vector.load %arg16[%c0_62, %c0_63] : memref<2x128xf32, #tpu.memory_space<vmem>>, vector<2x128xf32>
      tpu.vector_store %arg16[%c0_62, %c0_63], %144 {strides = array<i32>} : memref<2x128xf32, #tpu.memory_space<vmem>>, vector<2x128xf32>,
    } else {
    }
    return
  }
  func.func @transform_0(%arg0: i32) -> (i32, i32) {
    %c0_i32 = arith.constant 0 : i32
    %c0_i32_0 = arith.constant 0 : i32
    %c0_i32_1 = arith.constant 0 : i32
    return %c0_i32, %c0_i32_0 : i32, i32
  }
  func.func @transform_1(%arg0: i32) -> (i32, i32) {
    %c0_i32 = arith.constant 0 : i32
    %c0_i32_0 = arith.constant 0 : i32
    %c0_i32_1 = arith.constant 0 : i32
    return %c0_i32, %c0_i32_0 : i32, i32
  }
  func.func @transform_2(%arg0: i32) -> (i32, i32) {
    %c0_i32 = arith.constant 0 : i32
    %c0_i32_0 = arith.constant 0 : i32
    %c0_i32_1 = arith.constant 0 : i32
    return %c0_i32, %c0_i32_0 : i32, i32
  }
  func.func @transform_3(%arg0: i32) -> (i32, i32) {
    %c0_i32 = arith.constant 0 : i32
    %c0_i32_0 = arith.constant 0 : i32
    %c0_i32_1 = arith.constant 0 : i32
    return %c0_i32, %c0_i32_0 : i32, i32
  }
  func.func @transform_4(%arg0: i32) -> (i32, i32) {
    %c0_i32 = arith.constant 0 : i32
    %c0_i32_0 = arith.constant 0 : i32
    %c0_i32_1 = arith.constant 0 : i32
    return %c0_i32, %c0_i32_0 : i32, i32
  }
  func.func @transform_5(%arg0: i32) -> (i32, i32, i32) {
    %c0_i32 = arith.constant 0 : i32
    %c0_i32_0 = arith.constant 0 : i32
    %c0_i32_1 = arith.constant 0 : i32
    return %arg0, %c0_i32, %c0_i32_0 : i32, i32, i32
  }
  func.func @transform_6(%arg0: i32) -> (i32, i32, i32, i32) {
    %c0_i32 = arith.constant 0 : i32
    %c0_i32_0 = arith.constant 0 : i32
    %c0_i32_1 = arith.constant 0 : i32
    %c0_i32_2 = arith.constant 0 : i32
    return %arg0, %c0_i32, %c0_i32_0, %c0_i32_1 : i32, i32, i32, i32
  }
  func.func @transform_7(%arg0: i32) -> (i32, i32, i32) {
    %c0_i32 = arith.constant 0 : i32
    %c0_i32_0 = arith.constant 0 : i32
    %c0_i32_1 = arith.constant 0 : i32
    return %arg0, %c0_i32, %c0_i32_0 : i32, i32, i32
  }
  func.func @transform_8(%arg0: i32) -> (i32, i32, i32) {
    %c0_i32 = arith.constant 0 : i32
    %c0_i32_0 = arith.constant 0 : i32
    %c0_i32_1 = arith.constant 0 : i32
    return %arg0, %c0_i32, %c0_i32_0 : i32, i32, i32
  }
  func.func @transform_9(%arg0: i32) -> (i32, i32, i32) {
    %c0_i32 = arith.constant 0 : i32
    %c0_i32_0 = arith.constant 0 : i32
    %c0_i32_1 = arith.constant 0 : i32
    return %arg0, %c0_i32, %c0_i32_0 : i32, i32, i32
  }
  func.func @transform_10(%arg0: i32) -> (i32, i32, i32) {
    %c0_i32 = arith.constant 0 : i32
    %c0_i32_0 = arith.constant 0 : i32
    %c0_i32_1 = arith.constant 0 : i32
    return %arg0, %c0_i32, %c0_i32_0 : i32, i32, i32
  }
  func.func @transform_11(%arg0: i32) -> (i32, i32, i32) {
    %c0_i32 = arith.constant 0 : i32
    %c0_i32_0 = arith.constant 0 : i32
    %c0_i32_1 = arith.constant 0 : i32
    return %arg0, %c0_i32, %c0_i32_0 : i32, i32, i32
  }
  func.func @transform_12(%arg0: i32) -> (i32, i32, i32) {
    %c0_i32 = arith.constant 0 : i32
    %c0_i32_0 = arith.constant 0 : i32
    %c0_i32_1 = arith.constant 0 : i32
    return %arg0, %c0_i32, %c0_i32_0 : i32, i32, i32
  }
  func.func @transform_13(%arg0: i32) -> (i32, i32) {
    %c0_i32 = arith.constant 0 : i32
    %c0_i32_0 = arith.constant 0 : i32
    %c0_i32_1 = arith.constant 0 : i32
    return %c0_i32, %c0_i32_0 : i32, i32
  }
  func.func @transform_14(%arg0: i32) -> (i32, i32) {
    %c0_i32 = arith.constant 0 : i32
    %c0_i32_0 = arith.constant 0 : i32
    %c0_i32_1 = arith.constant 0 : i32
    return %c0_i32, %c0_i32_0 : i32, i32
  }
  func.func @transform_15(%arg0: i32) -> (i32, i32) {
    %c0_i32 = arith.constant 0 : i32
    %c0_i32_0 = arith.constant 0 : i32
    %c0_i32_1 = arith.constant 0 : i32
    return %c0_i32, %c0_i32_0 : i32, i32
  }
}

</mosaic_0001>

<bundles_post_ra>
// kernel: decoder_forward.1
= control target key start
LH: loop header
LB: loop body
LE: loop exit
PB: predicated region body
PF: predicated region fallthrough
CT: control target
= control target key end

     0   :  { %s5385_s0 = inlined_call_operand.vmem [shape: f32[16,64], index: 0, kind: input, shape index: {}]   ;;  %s5386_s1 = inlined_call_operand.vmem [shape: bf16[64,128], index: 1, kind: input, shape index: {}]   ;;  %s5387_s2 = inlined_call_operand.vmem [shape: f32[16,128], index: 2, kind: input, shape index: {}]   ;;  %s5388_s3 = inlined_call_operand.vmem [shape: f32[16,16], index: 3, kind: input, shape index: {}]   ;;  %s5389_s4 = inlined_call_operand.vmem [shape: f32[2,16], index: 4, kind: input, shape index: {}]   ;;  %s5390_s5 = inlined_call_operand.hbm [shape: bf16[2,128,768], index: 5, kind: input, shape index: {}]   ;;  %s5391_s6 = inlined_call_operand.vmem [shape: bf16[2,4,64,128], index: 6, kind: input, shape index: {}]   ;;  %s5392_s7 = inlined_call_operand.vmem [shape: f32[2,1,128], index: 7, kind: input, shape index: {}]   ;;  %s5393_s8 = inlined_call_operand.vmem [shape: f32[2,1,128], index: 8, kind: input, shape index: {}]   ;;  %s5394_s9 = inlined_call_operand.hbm [shape: bf16[2,128,1024], index: 9, kind: input, shape index: {}]   ;;  %s5395_s10 = inlined_call_operand.hbm [shape: bf16[2,1024,128], index: 10, kind: input, shape index: {}]   ;;  %s5396_s11 = inlined_call_operand.vmem [shape: f32[2,1,128], index: 11, kind: input, shape index: {}]   ;;  %s5397_s12 = inlined_call_operand.vmem [shape: f32[2,1,128], index: 12, kind: input, shape index: {}]   ;;  %s5398_s13 = inlined_call_operand.vmem [shape: bf16[128,128], index: 13, kind: input, shape index: {}]   ;;  %s5399_s14 = inlined_call_operand.vmem [shape: f32[1,128], index: 14, kind: input, shape index: {}]   ;;  %s5400_s15 = inlined_call_operand.hbm [shape: f32[2,128], index: 15, kind: output, shape index: {}]  }
   0x1   :  { %5410 = sst [smem:[#allocation16_spill]] %s5388_s3 }
   0x2   :  { %5411 = sst [smem:[#allocation17_spill]] %s5389_s4 }
   0x3   :  { %5412 = sst [smem:[#allocation18_spill]] %s5390_s5 }
   0x4   :  { %5413 = sst [smem:[#allocation19_spill]] %s5394_s9 }
   0x5   :  { %5414 = sst [smem:[#allocation20_spill]] %s5395_s10 }
   0x6   :  { %5415 = sst [smem:[#allocation21_spill]] %s5398_s13 }
   0x7   :  { %5416 = sst [smem:[#allocation22_spill]] %s5399_s14 }
   0x8   :  { %5417 = sst [smem:[#allocation23_spill]] %s5400_s15 }
   0x9   :  { %20 = vsyncpa [#allocation4], 0 }
   0xa   :  { %22 = vsyncpa [#allocation4 + $0x1], 0 }
   0xb   :  { %23 = vsyncpa [#allocation7], 0 }
   0xc   :  { %25 = vsyncpa [#allocation7 + $0x1], 0 }
   0xd   :  { %26 = vsyncpa [#allocation5], 0  ;;  %s4741_s18 = smov 0   ;;  %s4743_s19 = smov 0  }
   0xe   :  { %s4745_s20 = smov 0   ;;  %s4747_s21 = smov 0  }
   0xf LB: > { %5418 = sst [smem:[#allocation13_spill]] %s4636_s20  ;;  %s4760_s22 = sadd.s32 4294967295, %s4640_s21   ;;  %s4640_s21 = sphi %s4747_s21, %s5438_s21   ;;  %s4636_s20 = sphi %s4745_s20, %s5440_s20   ;;  %s4632_s19 = sphi %s4743_s19, %s5442_s19   ;;  %s4628_s18 = sphi %s4741_s18, %s5441_s18  }
  0x10   : > { %s4763_s23 = sadd.s32 1, %s4640_s21   ;;  %s144_s25 = sadd.s32 1, %s4636_s20 }
  0x11   : > { %5419 = sst [smem:[#allocation14_spill]] %s4763_s23  ;;  %s141_s24 = ssub.s32 %s4640_s21, %s4763_s23 }
  0x12   : > { %p142_p0 = scmp.eq.s32.totalorder %s141_s24, 0  ;;  %p151_p1 = scmp.ne.s32.totalorder %s4636_s20, %s4632_s19 }
  0x13   : > { %p152_p2 = scmp.eq.s32.totalorder %s4640_s21, 0  ;;  %p157_p3 = scmp.ne.s32.totalorder %s4632_s19, %s4628_s18 }
  0x14   : > { %s4773_s26 = scalar_select %p142_p0, %s4636_s20, %s144_s25  }
  0x15   : > { %p153_p4 = por %p152_p2, %p151_p1  ;;  %p158_p5 = scmp.eq.s32.totalorder %s4760_s22, 0 }
  0x16   : > { %5420 = sst [smem:[#allocation15_spill]] %s4773_s26  ;;  %p4221_p6 = scmp.lt.s32.totalorder %s4640_s21, 2 }
  0x17   : > { %p4777_p7 = por %p158_p5, %p157_p3  ;;  %s4782_s28 = sand.u32 1, %s4636_s20  }
  0x18   : > { %p4784_p8 = pnand %p4221_p6, %p153_p4  ;;  %s488_s30 = sand.u32 1, %s4640_s21  }
  0x19   : > { %s5421_s27 = scalar_select %p4777_p7, 1, 0 }
  0x1a   : > { %s5405_s16 = sshll.u32 %s4782_s28, 9  ;;  %s5406_s17 = sshll.u32 %s4640_s21, 13 }
  0x1b   : > { %s492_s18 = scalar_lea.vmem [#allocation6], %s5405_s16  ;;  %s5423_s9 = sld [smem:[#allocation19_spill]] }
  0x1c   : > { %s499_s24 = sshll.u32 %s492_s18, 4  ;;  %s4802_s20 = scalar_lea.sflag [#allocation7], %s488_s30  ;;  %s4800_s24 = int_to_ptr.vmem [resolvable:$true] %s499_s24 }
  0x1d   : > { %p4808_p10 = pneg %p4784_p8 }
  0x21   : > { %s4798_s23 = scalar_lea.hbm %s5423_s9, %s5406_s17  ;;  %s4487_s25 = scalar_lea.hbm %s5423_s9, 16384 }
  0x22   : > { %s4482_s15 = scalar_lea.hbm %s4798_s23, 8192  ;;  %p4488_p13 = scmp.lt.u32.totalorder %s4798_s23, %s5423_s9 }
  0x23   : > { %p4483_p9 = scmp.ne.s32.totalorder %s4798_s23, %s4482_s15  ;;  %p4489_p0 = scmp.lt.u32.totalorder %s4487_s25, %s4482_s15 }
  0x24   : > { %p4491_p2 = scmp.lt.u32.totalorder %s4482_s15, %s4798_s23 }
  0x25   : > { %p4485_p11 = pnand %p4808_p10, %p4483_p9  ;;  %p4490_p1 = por %p4489_p0, %p4488_p13 }
  0x27   : > { %p4486_p12 = pneg %p4485_p11  ;;  %p4492_p3 = por %p4491_p2, %p4490_p1 }
  0x29   : > { %p4493_p4 = pnand %p4492_p3, %p4486_p12 }
  0x2b   : > { %4496 = shalt.err (!%p4493_p4)
}
  0x2c   : > { %s4497_s30 = scalar_lea.vmem %s4800_s24, 8192  ;;  %s4642_s26 = smov [#allocation6]  }
  0x2d   : > { %p4498_p5 = scmp.ne.s32.totalorder %s4800_s24, %s4497_s30  ;;  %s4502_s18 = sshll.u32 %s4642_s26, 4  ;;  %s4503_s18 = int_to_ptr.vmem [resolvable:$false] %s4502_s18 }
  0x2e   : > { %s4504_s14 = scalar_lea.vmem %s4503_s18, 16384  ;;  %p4505_p11 = scmp.lt.s32.totalorder %s4800_s24, %s4503_s18 }
  0x2f   : > { %p4500_p6 = pnand %p4498_p5, %p4808_p10  ;;  %p4506_p7 = scmp.lt.s32.totalorder %s4504_s14, %s4497_s30 }
  0x31   : > { %p4501_p9 = pneg %p4500_p6  ;;  %p4507_p13 = por %p4506_p7, %p4505_p11 }
  0x33   : > { %p4508_p0 = pnand %p4507_p13, %p4501_p9 }
  0x35   : > { %4511 = shalt.err (!%p4508_p0)
}
  0x36   : > { %s4643_s15 = smov 512   ;;  %s4644_s17 = smov 32  }
  0x37   : > { %4217 = dma.hbm_to_vmem [thread:$0]  (!%p4784_p8), %s4798_s23, 8192, %s4800_s24, %s4802_s20, %s4643_s15, %s4643_s15, %s4644_s17  }
  0x38   : > { %s5425_s25 = sshll.u32 %s4640_s21, 13  ;;  %s5426_s10 = sld [smem:[#allocation20_spill]] }
  0x39   : > { %s5427_s14 = sshll.u32 %s4782_s28, 9  ;;  %p3682_p7 = scmp.ge.s32.totalorder %s4640_s21, 1 }
  0x3a   : > { %s513_s9 = scalar_lea.vmem [#allocation8], %s5427_s14  ;;  %p540_p12 = scmp.lt.s32.totalorder %s4640_s21, 3 }
  0x3b   : > { %s520_s4 = sshll.u32 %s513_s9, 4  ;;  %s4198_s13 = smul.u32 384, %s4782_s28  ;;  %s4842_s4 = int_to_ptr.vmem [resolvable:$true] %s520_s4 }
  0x3c   : > { %p4846_p1 = pnand %p3682_p7, %p540_p12  ;;  %s4199_s23 = smul.u32 6144, %s4640_s21 }
  0x3d   : > { %s5429_s5 = sld [smem:[#allocation18_spill]]  ;;  %s451_s9 = scalar_lea.vmem [#allocation3], %s4198_s13 }
  0x3e   : > { %s4837_s18 = scalar_lea.hbm %s5426_s10, %s5425_s25  ;;  %s458_s25 = sshll.u32 %s451_s9, 4  ;;  %s4856_s25 = int_to_ptr.vmem [resolvable:$true] %s458_s25 }
  0x3f   : > { %s5428_s3 = scalar_select %p4846_p1, 1, 0 }
  0x40   : > { %s448_s30 = scalar_lea.sflag [#allocation4], %s4782_s28 }
  0x43   : > { %s4854_s17 = scalar_lea.hbm %s5429_s5, %s4199_s23  ;;  %s4517_s24 = scalar_lea.hbm %s5429_s5, 12288 }
  0x44   : > { %s4512_s26 = scalar_lea.hbm %s4854_s17, 6144  ;;  %p4518_p5 = scmp.lt.u32.totalorder %s4854_s17, %s5429_s5 }
  0x45   : > { %p4513_p2 = scmp.ne.s32.totalorder %s4854_s17, %s4512_s26  ;;  %p4519_p6 = scmp.lt.u32.totalorder %s4517_s24, %s4512_s26 }
  0x46   : > { %p4521_p11 = scmp.lt.u32.totalorder %s4512_s26, %s4854_s17 }
  0x47   : > { %p4515_p3 = pnand %p4513_p2, %p4808_p10  ;;  %p4520_p9 = por %p4519_p6, %p4518_p5 }
  0x49   : > { %p4516_p4 = pneg %p4515_p3  ;;  %p4522_p13 = por %p4521_p11, %p4520_p9 }
  0x4b   : > { %p4523_p0 = pnand %p4522_p13, %p4516_p4 }
  0x4d   : > { %4526 = shalt.err (!%p4523_p0)
}
  0x4e   : > { %s4527_s13 = scalar_lea.vmem %s4856_s25, 6144  ;;  %s4645_s9 = smov [#allocation3]  }
  0x4f   : > { %p4528_p7 = scmp.ne.s32.totalorder %s4856_s25, %s4527_s13  ;;  %s4532_s21 = sshll.u32 %s4645_s9, 4  ;;  %s4533_s21 = int_to_ptr.vmem [resolvable:$false] %s4532_s21 }
  0x50   : > { %s4534_s14 = scalar_lea.vmem %s4533_s21, 12288  ;;  %p4535_p3 = scmp.lt.s32.totalorder %s4856_s25, %s4533_s21 }
  0x51   : > { %p4530_p12 = pnand %p4528_p7, %p4808_p10  ;;  %p4536_p1 = scmp.lt.s32.totalorder %s4534_s14, %s4527_s13 }
  0x53   : > { %p4531_p2 = pneg %p4530_p12  ;;  %p4537_p5 = por %p4536_p1, %p4535_p3 }
  0x55   : > { %p4538_p6 = pnand %p4537_p5, %p4531_p2 }
  0x57   : > { %4541 = shalt.err (!%p4538_p6)
}
  0x58   : > { %s4646_s26 = smov 384   ;;  %s4647_s24 = smov 24  }
  0x59   : > { %4214 = dma.hbm_to_vmem [thread:$0]  (!%p4784_p8), %s4854_s17, 6144, %s4856_s25, %s448_s30, %s4646_s26, %s4646_s26, %s4647_s24  }
  0x5a   : > { %s4542_s23 = scalar_lea.hbm %s4837_s18, 8192  ;;  %s4547_s9 = scalar_lea.hbm %s5426_s10, 16384 }
  0x5b   : > { %p4543_p4 = scmp.ne.s32.totalorder %s4837_s18, %s4542_s23  ;;  %p4548_p11 = scmp.lt.u32.totalorder %s4837_s18, %s5426_s10 }
  0x5c   : > { %p4549_p13 = scmp.lt.u32.totalorder %s4547_s9, %s4542_s23  ;;  %p4551_p7 = scmp.lt.u32.totalorder %s4542_s23, %s4837_s18 }
  0x5d   : > { %p4545_p1 = pnand %p4543_p4, %p4808_p10 }
  0x5e   : > { %p4550_p0 = por %p4549_p13, %p4548_p11 }
  0x5f   : > { %p4546_p9 = pneg %p4545_p1 }
  0x60   : > { %p4552_p12 = por %p4551_p7, %p4550_p0 }
  0x62   : > { %p4553_p2 = pnand %p4552_p12, %p4546_p9 }
  0x64   : > { %4556 = shalt.err (!%p4553_p2)
}
  0x65   : > { %s4557_s28 = scalar_lea.vmem %s4842_s4, 8192  ;;  %s4648_s17 = smov [#allocation8]  }
  0x66   : > { %p4558_p3 = scmp.ne.s32.totalorder %s4842_s4, %s4557_s28  ;;  %s4562_s25 = sshll.u32 %s4648_s17, 4  ;;  %s4563_s25 = int_to_ptr.vmem [resolvable:$false] %s4562_s25 }
  0x67   : > { %s4564_s30 = scalar_lea.vmem %s4563_s25, 16384  ;;  %p4565_p4 = scmp.lt.s32.totalorder %s4842_s4, %s4563_s25 }
  0x68   : > { %p4560_p5 = pnand %p4558_p3, %p4808_p10  ;;  %p4566_p1 = scmp.lt.s32.totalorder %s4564_s30, %s4557_s28 }
  0x6a   : > { %p4561_p6 = pneg %p4560_p5  ;;  %p4567_p11 = por %p4566_p1, %p4565_p4 }
  0x6c   : > { %p4568_p13 = pnand %p4567_p11, %p4561_p6 }
  0x6e   : > { %4571 = shalt.err (!%p4568_p13)
}
  0x6f   : > { %s4649_s26 = smov 64   ;;  %s4650_s24 = smov 4  }
  0x70   : > { %4220 = dma.hbm_to_vmem [thread:$0]  (!%p4784_p8), %s4837_s18, 8192, %s4842_s4, %s4802_s20, %s4649_s26, %s4649_s26, %s4650_s24  }
  0x71   : > { %p5430_p10 = scmp.ne.s32.totalorder %s5428_s3, 0 }
  0x72   : > { %s546_s16 = sand.u32 (!%p5430_p10), 1, %s4632_s19   ;;  %p5431_p9 = scmp.ne.s32.totalorder (!%p5430_p10), %s5421_s27, 0 }
  0x73   : > { %544 = sbr.rel (%p5430_p10) target bundleno = 3602 (0xe12), region = 80  ;;  %s547_s15 = scalar_lea.sflag (!%p5430_p10), [#allocation4], %s546_s16 }
  0x74   : > { %s4200_s23 = smul.u32 (!%p5430_p10), 384, %s546_s16 }
  0x76   : > { %s4907_s13 = scalar_lea.vmem (!%p5430_p10), [#allocation3], %s4200_s23 }
  0x7a   : > { %4615 = dma.done.wait (%p5431_p9), %s547_s15, 6144  }
  0x7b   : > { %4617 = vsyncadd (%p5431_p9), %s547_s15, 4294961152  ;;  %s555_s9 = sand.u32 1, %s4760_s22   ;;  %s3683_s29 = sshll.u32 %s546_s16, 9 }
  0x7c   : > { %s556_s4 = scalar_lea.sflag [#allocation7], %s555_s9  ;;  %s4914_s20 = scalar_lea.vmem [#allocation6], %s3683_s29 }
  0x7d   : > { %4619 = dma.done.wait (%p5431_p9), %s556_s4, 16384  }
  0x7e   : > { %4621 = vsyncadd (%p5431_p9), %s556_s4, 4294950912  ;;  %p637_p8 = scmp.lt.s32.totalorder %s4760_s22, 1  ;;  %s4946_s10 = scalar_lea.vmem [#allocation8], %s3683_s29 }
  0x7f   : > { %p3687_p0 = scmp.ne.s32.totalorder %s4760_s22, 0 }
  0x80   : > { %s4922_s3 = scalar_select %p637_p8, %s4760_s22, 1 }
  0x81   : > { %658 = sbr.rel (%p3687_p0) target bundleno = 363 (0x16b), region = 96  ;;  %v4272_v0 = vld [vmem:[%s5386_s1] sm:$0xff] (!%p3687_p0)   ;;  %v4651_v1 = vmov (!%p3687_p0), 0.0   ;;  %v4273_v2 = vld [vmem:[%s5386_s1 + $0x8] sm:$0xff] (!%p3687_p0)   ;;  %vm4652_vm0 = vmmov (!%p3687_p0), 0   ;;  %v4274_v3 = vld [vmem:[%s5386_s1 + $0x10] sm:$0xff] (!%p3687_p0)  }
  0x82   : > { %s3918_s18 = sshll.u32 %s4922_s3, 7  ;;  %s644_s28 = scalar_lea.vmem %s5392_s7, %s4922_s3  ;;  %4060 = vmatprep.subr.bf16.mxu0 (!%p3687_p0), %v4651_v1  ;;  %4068 = vmatprep.mubr.msk.bf16.mxu0 (!%p3687_p0), %vm4652_vm0, %v4651_v1  ;;  %v4275_v4 = vld [vmem:[%s5386_s1 + $0x18] sm:$0xff] (!%p3687_p0)   ;;  %v659_v5 = vld [vmem:[%s5385_s0] sm:$0xff] (!%p3687_p0)  ;;  %v660_v6 = vld [vmem:[%s5385_s0 + $0x8] sm:$0xff] (!%p3687_p0)  ;;  %vm696_vm1 = vcmask (!%p3687_p0), 523264  }
  0x83   : > { %s4932_s27 = scalar_lea.vmem %s5391_s6, %s3918_s18  ;;  %s647_s24 = scalar_lea.vmem %s5393_s8, %s4922_s3  ;;  %4061 = vmatpush3.bf16.msra.mxu0 (!%p3687_p0), %v4272_v0  ;;  %v661_v7 = vpack.c.bf16 (!%p3687_p0), %v660_v6, %v659_v5  ;;  %v670_v8 = vld [vmem:[%s5387_s2] sm:$0xff] (!%p3687_p0)  ;;  %v671_v10 = vld [vmem:[%s5387_s2 + $0x8] sm:$0xff] (!%p3687_p0) }
  0x84   : > { %s650_s15 = scalar_lea.vmem %s5396_s11, %s4922_s3  ;;  %s653_s5 = scalar_lea.vmem %s5397_s12, %s4922_s3  ;;  %4062 = vmatprep.subr.bf16.mxu0 (!%p3687_p0), %v4651_v1 }
  0x87   : > { %4063 = vmatpush3.bf16.msra.mxu0 (!%p3687_p0), %v4273_v2 }
  0x88   : > { %4064 = vmatprep.subr.bf16.mxu0 %v4651_v1 }
  0x8b   : > { %4065 = vmatpush3.bf16.msra.mxu0 %v4274_v3 }
  0x8c   : > { %4066 = vmatprep.subr.bf16.mxu0 %v4651_v1 }
  0x8f   : > { %4067 = vmatpush3.bf16.msra.mxu0 %v4275_v4 }
  0x92   : > { %4069 = vmatmul.mubr.msk.bf16.vlgmr.msra.gmra.mrb[0].mxu0 %vm696_vm1, %v661_v7 }
 0x165   : > { %v734_v9 = vpop.f32.mrb[0].mxu0 }
 0x166   : > { %v735_v11 = vadd.f32 %v734_v9, %v670_v8  ;;  %v4070_v12 = vpop.f32.mrb[1].mxu0 }
 0x167   : > { %v737_v13 = vpop.f32.mrb[2].mxu0 }
 0x168   : > { %741 = vst [vmem:[#allocation2] sm:$0xff] %v735_v11  ;;  %v738_v14 = vadd.f32 %v737_v13, %v671_v10  ;;  %v4071_v15 = vpop.f32.mrb[3].mxu0 }
 0x16a   : > { %742 = vst [vmem:[#allocation2 + $0x8] sm:$0xff] %v738_v14 }
 0x16b PF: > { %v4276_v16 = vld [vmem:[%s4907_s13 + $0xc] ss:$24 sps:$4 sm:$0xff]   ;;  %v4278_v17 = vld [vmem:[%s4907_s13 + $0x8] ss:$24 sps:$4 sm:$0xff]   ;;  %v4653_v18 = vmov 0   ;;  %v4654_v52 = vmov 0.0  }
 0x16c   : > { %1109 = vmatprep.mubr.bf16.mxu1 %v4653_v18  ;;  %1066 = vmatprep.mubr.bf16.mxu0 %v4653_v18  ;;  %v4279_v19 = vld [vmem:[%s4907_s13 + $0x3c] ss:$24 sps:$4 sm:$0xff]   ;;  %v4283_v21 = vld [vmem:[%s4907_s13 + $0x38] ss:$24 sps:$4 sm:$0xff]   ;;  %v4285_v23 = vld [vmem:[%s4907_s13 + $0x6c] ss:$24 sps:$4 sm:$0xff]  }
 0x16d   : > { %1077 = vmatprep.subr.bf16.mxu1 %v4276_v16  ;;  %v4281_v20 = vld [vmem:[%s4907_s13 + $0x4] ss:$24 sps:$4 sm:$0xff]   ;;  %v4284_v22 = vld [vmem:[%s4907_s13] ss:$24 sps:$4 sm:$0xff]   ;;  %v4287_v24 = vld [vmem:[%s4907_s13 + $0x34] ss:$24 sps:$4 sm:$0xff]  }
 0x16e   : > { %1078 = vmatpush1.bf16.msra.mxu1 %v4278_v17  ;;  %1034 = vmatprep.subr.bf16.mxu0 %v4281_v20  ;;  %v4290_v25 = vld [vmem:[%s4907_s13 + $0x30] ss:$24 sps:$4 sm:$0xff]   ;;  %v4291_v27 = vld [vmem:[%s4907_s13 + $0x9c] ss:$24 sps:$4 sm:$0xff]   ;;  %v4296_v29 = vld [vmem:[%s4907_s13 + $0x60] ss:$24 sps:$4 sm:$0xff]  }
 0x16f   : > { %1079 = vmatprep.subr.bf16.mxu1 %v4279_v19  ;;  %1035 = vmatpush1.bf16.msra.mxu0 %v4284_v22  ;;  %v4289_v26 = vld [vmem:[%s4907_s13 + $0x68] ss:$24 sps:$4 sm:$0xff]   ;;  %v4293_v28 = vld [vmem:[%s4907_s13 + $0x64] ss:$24 sps:$4 sm:$0xff]   ;;  %v4295_v30 = vld [vmem:[%s4907_s13 + $0x98] ss:$24 sps:$4 sm:$0xff]  }
 0x170   : > { %1036 = vmatprep.subr.bf16.mxu0 %v4287_v24  ;;  %v4299_v31 = vld [vmem:[%s4907_s13 + $0x94] ss:$24 sps:$4 sm:$0xff]   ;;  %v4301_v33 = vld [vmem:[%s4907_s13 + $0xc8] ss:$24 sps:$4 sm:$0xff]   ;;  %v4305_v35 = vld [vmem:[%s4907_s13 + $0xc4] ss:$24 sps:$4 sm:$0xff]  }
 0x171   : > { %v4297_v32 = vld [vmem:[%s4907_s13 + $0xcc] ss:$24 sps:$4 sm:$0xff]   ;;  %v4302_v34 = vld [vmem:[%s4907_s13 + $0x90] ss:$24 sps:$4 sm:$0xff]   ;;  %v4303_v36 = vld [vmem:[%s4907_s13 + $0xfc] ss:$24 sps:$4 sm:$0xff]  }
 0x172   : > { %1080 = vmatpush1.bf16.msra.mxu1 %v4283_v21  ;;  %v4308_v37 = vld [vmem:[%s4907_s13 + $0xc0] ss:$24 sps:$4 sm:$0xff]   ;;  %v4311_v39 = vld [vmem:[%s4907_s13 + $0xf4] ss:$24 sps:$4 sm:$0xff]   ;;  %v4314_v42 = vld [vmem:[%s4907_s13 + $0xf0] ss:$24 sps:$4 sm:$0xff]  }
 0x173   : > { %1081 = vmatprep.subr.bf16.mxu1 %v4285_v23  ;;  %1037 = vmatpush1.bf16.msra.mxu0 %v4290_v25  ;;  %v4307_v38 = vld [vmem:[%s4907_s13 + $0xf8] ss:$24 sps:$4 sm:$0xff]   ;;  %v4309_v40 = vld [vmem:[%s4907_s13 + $0x12c] ss:$24 sps:$4 sm:$0xff]   ;;  %v4313_v41 = vld [vmem:[%s4907_s13 + $0x128] ss:$24 sps:$4 sm:$0xff]  }
 0x174   : > { %1038 = vmatprep.subr.bf16.mxu0 %v4293_v28  ;;  %v4317_v43 = vld [vmem:[%s4907_s13 + $0x124] ss:$24 sps:$4 sm:$0xff]   ;;  %v4320_v45 = vld [vmem:[%s4907_s13 + $0x120] ss:$24 sps:$4 sm:$0xff]   ;;  %v743_v47 = vld [vmem:[#allocation2] sm:$0xff]  ;;  %vm4655_vm2 = vmmov 0  }
 0x175   : > { %v4315_v44 = vld [vmem:[%s4907_s13 + $0x15c] ss:$24 sps:$4 sm:$0xff]   ;;  %v4319_v46 = vld [vmem:[%s4907_s13 + $0x158] ss:$24 sps:$4 sm:$0xff]   ;;  %vm1189_vm3 = vcmask 523264   ;;  %s4656_s29 = smov 64  }
 0x176   : > { %1082 = vmatpush1.bf16.msra.mxu1 %v4289_v26  ;;  %v744_v48 = vld [vmem:[#allocation2 + $0x8] sm:$0xff]  ;;  %v4321_v49 = vld [vmem:[%s4907_s13 + $0x154] ss:$24 sps:$4 sm:$0xff]   ;;  %v4323_v50 = vld [vmem:[%s4907_s13 + $0x150] ss:$24 sps:$4 sm:$0xff]   ;;  %s5432_s30 = sld [smem:[#allocation16_spill]] }
 0x177   : > { %1083 = vmatprep.subr.bf16.mxu1 %v4291_v27  ;;  %1039 = vmatpush1.bf16.msra.mxu0 %v4296_v29  ;;  %v5007_v51 = vpack.c.bf16 %v744_v48, %v743_v47  ;;  %v4324_v2 = vld [vmem:[%s4907_s13 + $0x10] ss:$24 sps:$4 sm:$0xff]   ;;  %v4326_v3 = vld [vmem:[%s4907_s13 + $0x14] ss:$24 sps:$4 sm:$0xff]   ;;  %v4329_v4 = vld [vmem:[%s4907_s13 + $0x44] ss:$24 sps:$4 sm:$0xff]  }
 0x178   : > { %1040 = vmatprep.subr.bf16.mxu0 %v4299_v31  ;;  %v4327_v5 = vld [vmem:[%s4907_s13 + $0x40] ss:$24 sps:$4 sm:$0xff]   ;;  %v4332_v6 = vld [vmem:[%s4907_s13 + $0x74] ss:$24 sps:$4 sm:$0xff]   ;;  %v4330_v7 = vld [vmem:[%s4907_s13 + $0x70] ss:$24 sps:$4 sm:$0xff]  }
 0x179   : > { %v4335_v8 = vld [vmem:[%s4907_s13 + $0xa4] ss:$24 sps:$4 sm:$0xff]   ;;  %v4333_v9 = vld [vmem:[%s4907_s13 + $0xa0] ss:$24 sps:$4 sm:$0xff]   ;;  %v4338_v10 = vld [vmem:[%s4907_s13 + $0xd4] ss:$24 sps:$4 sm:$0xff]  }
 0x17a   : > { %1084 = vmatpush1.bf16.msra.mxu1 %v4295_v30  ;;  %v4336_v12 = vld [vmem:[%s4907_s13 + $0xd0] ss:$24 sps:$4 sm:$0xff]   ;;  %v4341_v14 = vld [vmem:[%s4907_s13 + $0x104] ss:$24 sps:$4 sm:$0xff]   ;;  %v4339_v15 = vld [vmem:[%s4907_s13 + $0x100] ss:$24 sps:$4 sm:$0xff]  }
 0x17b   : > { %1085 = vmatprep.subr.bf16.mxu1 %v4297_v32  ;;  %1041 = vmatpush1.bf16.msra.mxu0 %v4302_v34  ;;  %v4344_v16 = vld [vmem:[%s4907_s13 + $0x134] ss:$24 sps:$4 sm:$0xff]   ;;  %v4342_v19 = vld [vmem:[%s4907_s13 + $0x130] ss:$24 sps:$4 sm:$0xff]   ;;  %v4347_v21 = vld [vmem:[%s4907_s13 + $0x164] ss:$24 sps:$4 sm:$0xff]  }
 0x17c   : > { %1042 = vmatprep.subr.bf16.mxu0 %v4305_v35  ;;  %v4345_v22 = vld [vmem:[%s4907_s13 + $0x160] ss:$24 sps:$4 sm:$0xff]   ;;  %v1386_v27 = vld [vmem:[%s5432_s30] sm:$0xff]  ;;  %vm1396_vm4 = vcmask 130048   ;;  %p3901_p7 = scmp.ne.s32.totalorder %s4760_s22, 1 }
 0x17d   : > { %v1387_v31 = vld [vmem:[%s5432_s30 + $0x8] sm:$0xff]  ;;  %s5433_s18 = sld [smem:[#allocation21_spill]] (!%p3901_p7)  ;;  %vm4658_vm5 = vmmov (!%p3901_p7), 0   ;;  %s5435_s17 = sld [smem:[#allocation17_spill]] (!%p3901_p7)  ;;  %vm3511_vm6 = vcmask (!%p3901_p7), 1041408  }
 0x17e   : > { %1086 = vmatpush1.bf16.msra.mxu1 %v4301_v33 }
 0x17f   : > { %1087 = vmatprep.subr.bf16.mxu1 %v4303_v36  ;;  %1043 = vmatpush1.bf16.msra.mxu0 %v4308_v37 }
 0x180   : > { %1044 = vmatprep.subr.bf16.mxu0 %v4311_v39 }
 0x182   : > { %1088 = vmatpush1.bf16.msra.mxu1 %v4307_v38 }
 0x183   : > { %1089 = vmatprep.subr.bf16.mxu1 %v4309_v40  ;;  %1045 = vmatpush1.bf16.msra.mxu0 %v4314_v42  ;;  %s5434_s14 = smov (!%p3901_p7), %s5433_s18 }
 0x184   : > { %1046 = vmatprep.subr.bf16.mxu0 %v4317_v43 }
 0x186   : > { %1090 = vmatpush1.bf16.msra.mxu1 %v4313_v41 }
 0x187   : > { %1091 = vmatprep.subr.bf16.mxu1 %v4315_v44  ;;  %1047 = vmatpush1.bf16.msra.mxu0 %v4320_v45 }
 0x188   : > { %1048 = vmatprep.subr.bf16.mxu0 %v4321_v49 }
 0x18a   : > { %1092 = vmatpush1.bf16.msra.mxu1 %v4319_v46 }
 0x18b   : > { %1049 = vmatpush1.bf16.msra.mxu0 %v4323_v50  ;;  %4072 = vmatprep.subr.bf16.mxu1 %v4654_v52 }
 0x18c   : > { %1120 = vmatprep.subr.bf16.mxu0 %v4326_v3 }
 0x18d   : > { %1110 = vmatmul.mubr.bf16.vlgmr.msra.gmra.mrb[0].mxu1 %v5007_v51 }
 0x18e   : > { %1067 = vmatmul.mubr.bf16.vlgmr.msra.gmra.mrb[0].mxu0 %v5007_v51  ;;  %4074 = vmatprep.mubr.msk.bf16.mxu1 %vm4655_vm2, %v4654_v52 }
 0x18f   : > { %1152 = vmatprep.mubr.bf16.mxu0 %v4653_v18  ;;  %1121 = vmatpush1.bf16.msra.mxu0 %v4324_v2 }
 0x190   : > { %1122 = vmatprep.subr.bf16.mxu0 %v4329_v4 }
 0x193   : > { %1123 = vmatpush1.bf16.msra.mxu0 %v4327_v5 }
 0x194   : > { %1124 = vmatprep.subr.bf16.mxu0 %v4332_v6 }
 0x197   : > { %1125 = vmatpush1.bf16.msra.mxu0 %v4330_v7 }
 0x198   : > { %1126 = vmatprep.subr.bf16.mxu0 %v4335_v8 }
 0x19b   : > { %1127 = vmatpush1.bf16.msra.mxu0 %v4333_v9 }
 0x19c   : > { %1128 = vmatprep.subr.bf16.mxu0 %v4338_v10 }
 0x19f   : > { %1129 = vmatpush1.bf16.msra.mxu0 %v4336_v12 }
 0x1a0   : > { %1130 = vmatprep.subr.bf16.mxu0 %v4341_v14 }
 0x1a3   : > { %1131 = vmatpush1.bf16.msra.mxu0 %v4339_v15 }
 0x1a4   : > { %1132 = vmatprep.subr.bf16.mxu0 %v4344_v16 }
 0x1a7   : > { %1133 = vmatpush1.bf16.msra.mxu0 %v4342_v19 }
 0x1a8   : > { %1134 = vmatprep.subr.bf16.mxu0 %v4347_v21 }
 0x1ab   : > { %1135 = vmatpush1.bf16.msra.mxu0 %v4345_v22 }
 0x1ac   : > { %4096 = vmatprep.subr.bf16.mxu0 %v4654_v52 }
 0x1ae   : > { %1153 = vmatmul.mubr.bf16.vlgmr.msra.gmra.mrb[4].mxu0 %v5007_v51 }
 0x1af   : > { %4098 = vmatprep.mubr.msk.bf16.mxu0 %vm4655_vm2, %v4654_v52 }
 0x260   : > { %v1111_v53 = vpop.f32.mrb[0].mxu1 }
 0x261   : > { %v1113_v54 = vpop.f32.mrb[1].mxu1  ;;  %v1068_v58 = vpop.f32.mrb[0].mxu0 }
 0x262   : > { %v1115_v55 = vpop.f32.mrb[2].mxu1  ;;  %v1070_v60 = vpop.f32.mrb[1].mxu0 }
 0x263   : > { %v1165_v56 = vpack.c.bf16 %v1115_v55, %v1111_v53  ;;  %v1117_v57 = vpop.f32.mrb[3].mxu1  ;;  %v1072_v62 = vpop.f32.mrb[2].mxu0 }
 0x264   : > { %v1166_v59 = vpack.c.bf16 %v1117_v57, %v1113_v54  ;;  %v1163_v63 = vpack.c.bf16 %v1072_v62, %v1068_v58  ;;  %v1074_v0 = vpop.f32.mrb[3].mxu0 }
 0x265   : > { %v1194_v61 = vsel %vm1189_vm3, %v1165_v56, 0  ;;  %1176 = vrot.lane.b32.xlu0 %v1165_v56, %s4656_s29  ;;  %v1164_v1 = vpack.c.bf16 %v1074_v0, %v1070_v60 }
 0x266   : > { %4073 = vmatpush3.bf16.xpose.msra.mxu1 %v1194_v61  ;;  %1179 = vrot.lane.b32.xlu1 %v1166_v59, %s4656_s29  ;;  %v1288_v20 = vsel %vm1189_vm3, %v1166_v59, 0 }
 0x267   : > { %4078 = vmatprep.subr.bf16.mxu1 %v4654_v52 }
 0x269   : > { %1170 = vrot.lane.b32.xlu0 %v1163_v63, %s4656_s29 }
 0x26a   : > { %1173 = vrot.lane.b32.xlu1 %v1164_v1, %s4656_s29 }
 0x26d   : > { %4075 = vmatmul.mubr.msk.bf16.vlgmr.msra.gmra.mrb[4].mxu1 %vm1189_vm3, %v1163_v63 }
 0x26e   : > { %4080 = vmatprep.mubr.msk.bf16.mxu1 %vm4655_vm2, %v4654_v52 }
 0x281   : > { %v1154_v15 = vpop.f32.mrb[4].mxu0 }
 0x282   : > { %v1156_v16 = vpop.f32.mrb[5].mxu0 }
 0x2d7   : > { %v1177_v11 = vpop.permute.xlu0 %1176 }
 0x2d8   : > { %v1241_v13 = vsel %vm1189_vm3, %v1177_v11, 0  ;;  %v1180_v23 = vpop.permute.xlu1 %1179 }
 0x2d9   : > { %4079 = vmatpush3.bf16.xpose.msra.mxu1 %v1241_v13  ;;  %v1335_v24 = vsel %vm1189_vm3, %v1180_v23, 0 }
 0x2da   : > { %4084 = vmatprep.subr.bf16.mxu1 %v4654_v52 }
 0x2db   : > { %v1171_v17 = vpop.permute.xlu0 %1170 }
 0x2dc   : > { %v1174_v25 = vpop.permute.xlu1 %1173 }
 0x2e0   : > { %4081 = vmatmul.mubr.msk.bf16.vlgmr.msra.gmra.mrb[8].mxu1 %vm1189_vm3, %v1171_v17  ;;  %v1158_v17 = vpop.f32.mrb[6].mxu0 }
 0x2e1   : > { %4085 = vmatpush3.bf16.xpose.msra.mxu1 %v1288_v20  ;;  %4086 = vmatprep.mubr.msk.bf16.mxu1 %vm4655_vm2, %v4654_v52  ;;  %v1167_v19 = vpack.c.bf16 %v1158_v17, %v1154_v15  ;;  %v1160_v20 = vpop.f32.mrb[7].mxu0 }
 0x2e2   : > { %4090 = vmatprep.subr.bf16.mxu1 %v4654_v52  ;;  %v1168_v21 = vpack.c.bf16 %v1160_v20, %v1156_v16  ;;  %v4349_v16 = vld [vmem:[%s4932_s27 + $0x8] sm:$0xff]  }
 0x2e3   : > { %4097 = vmatpush3.bf16.msra.mxu0 %v1167_v19 }
 0x2e4   : > { %4108 = vmatprep.subr.bf16.mxu0 %v4654_v52 }
 0x2e8   : > { %4087 = vmatmul.mubr.msk.bf16.vlgmr.msra.gmra.mrb[12].mxu1 %vm1189_vm3, %v1164_v1 }
 0x2e9   : > { %4091 = vmatpush3.bf16.xpose.msra.mxu1 %v1335_v24  ;;  %4092 = vmatprep.mubr.msk.bf16.mxu1 %vm4655_vm2, %v4654_v52 }
 0x2ea   : > { %4102 = vmatprep.subr.bf16.mxu1 %v4654_v52 }
 0x2f0   : > { %4093 = vmatmul.mubr.msk.bf16.vlgmr.msra.gmra.mrb[16].mxu1 %vm1189_vm3, %v1174_v25 }
 0x2f1   : > { %4104 = vmatprep.mubr.msk.bf16.mxu1 %vm4655_vm2, %v4654_v52 }
 0x340   : > { %v1230_v26 = vpop.f32.mrb[4].mxu1 }
 0x341   : > { %v1378_v28 = vmul.f32 0.125, %v1230_v26  ;;  %v4076_v29 = vpop.f32.mrb[5].mxu1 }
 0x342   : > { %v1233_v30 = vpop.f32.mrb[6].mxu1 }
 0x343   : > { %v1379_v32 = vmul.f32 0.125, %v1233_v30  ;;  %v4077_v33 = vpop.f32.mrb[7].mxu1  ;;  %v1388_v34 = vadd.f32 %v1386_v27, %v1378_v28 }
 0x345   : > { %v1397_v35 = vsel %vm1396_vm4, %v1388_v34, -inf  ;;  %v1389_v36 = vadd.f32 %v1387_v31, %v1379_v32 }
 0x346   : > { %1398 = vmax.xlane.f32.xlu0 %v1397_v35 }
 0x347   : > { %v1400_v37 = vsel %vm1396_vm4, %v1389_v36, -inf }
 0x348   : > { %1401 = vmax.xlane.f32.xlu1 %v1400_v37 }
 0x3b3   : > { %v1277_v38 = vpop.f32.mrb[8].mxu1 }
 0x3b4   : > { %v1380_v39 = vmul.f32 0.125, %v1277_v38  ;;  %v4082_v40 = vpop.f32.mrb[9].mxu1 }
 0x3b5   : > { %v1280_v41 = vpop.f32.mrb[10].mxu1 }
 0x3b6   : > { %v1381_v42 = vmul.f32 0.125, %v1280_v41  ;;  %v4083_v43 = vpop.f32.mrb[11].mxu1  ;;  %v1390_v44 = vadd.f32 %v1386_v27, %v1380_v39 }
 0x3b8   : > { %v1403_v45 = vsel %vm1396_vm4, %v1390_v44, -inf  ;;  %v1391_v46 = vadd.f32 %v1387_v31, %v1381_v42 }
 0x3b9   : > { %1404 = vmax.xlane.f32.xlu0 %v1403_v45 }
 0x3ba   : > { %v1406_v50 = vsel %vm1396_vm4, %v1391_v46, -inf }
 0x3bb   : > { %v1324_v47 = vpop.f32.mrb[12].mxu1 }
 0x3bc   : > { %v1382_v48 = vmul.f32 0.125, %v1324_v47  ;;  %v4088_v49 = vpop.f32.mrb[13].mxu1 }
 0x3bd   : > { %1407 = vmax.xlane.f32.xlu0 %v1406_v50  ;;  %v1327_v51 = vpop.f32.mrb[14].mxu1 }
 0x3be   : > { %v1383_v53 = vmul.f32 0.125, %v1327_v51  ;;  %v4089_v54 = vpop.f32.mrb[15].mxu1  ;;  %v1392_v55 = vadd.f32 %v1386_v27, %v1382_v48 }
 0x3c0   : > { %v1409_v56 = vsel %vm1396_vm4, %v1392_v55, -inf  ;;  %v1393_v57 = vadd.f32 %v1387_v31, %v1383_v53 }
 0x3c1   : > { %1410 = vmax.xlane.f32.xlu1 %v1409_v56 }
 0x3c2   : > { %v1412_v58 = vsel %vm1396_vm4, %v1393_v57, -inf }
 0x3c3   : > { %1413 = vmax.xlane.f32.xlu0 %v1412_v58  ;;  %v1371_v59 = vpop.f32.mrb[16].mxu1 }
 0x3c4   : > { %v1384_v60 = vmul.f32 0.125, %v1371_v59  ;;  %v4094_v61 = vpop.f32.mrb[17].mxu1 }
 0x3c5   : > { %v1374_v62 = vpop.f32.mrb[18].mxu1 }
 0x3c6   : > { %v1385_v63 = vmul.f32 0.125, %v1374_v62  ;;  %v4095_v0 = vpop.f32.mrb[19].mxu1  ;;  %v1394_v1 = vadd.f32 %v1386_v27, %v1384_v60 }
 0x3c8   : > { %v1415_v2 = vsel %vm1396_vm4, %v1394_v1, -inf  ;;  %v1395_v3 = vadd.f32 %v1387_v31, %v1385_v63 }
 0x3c9   : > { %1416 = vmax.xlane.f32.xlu1 %v1415_v2 }
 0x3ca   : > { %v1418_v4 = vsel %vm1396_vm4, %v1395_v3, -inf }
 0x3cb   : > { %1419 = vmax.xlane.f32.xlu0 %v1418_v4 }
 0x3d3   : > { %v1399_v5 = vpop.xlane.xlu0 %1398 }
 0x3d4   : > { %v1421_v6 = vsub.f32 %v1388_v34, %v1399_v5 }
 0x3d5   : > { %v1402_v7 = vpop.xlane.xlu1 %1401 }
 0x3d6   : > { %v1429_v8 = vmul.f32 1.442695, %v1421_v6  ;;  %v1422_v9 = vsub.f32 %v1389_v36, %v1402_v7 }
 0x3d8   : > { %4428 = vpow2.f32 %v1429_v8  ;;  %v1431_v10 = vmul.f32 1.442695, %v1422_v9 }
 0x3da   : > { %4430 = vpow2.f32 %v1431_v10 }
 0x3e2   : > { %v5073_v11 = vpop.eup %4428 }
 0x3e3   : > { %v1445_v12 = vsel %vm1396_vm4, %v5073_v11, 0.0 }
 0x3e4   : > { %v4431_v13 = vpop.eup %4430  ;;  %1446 = vadd.xlane.f32.xlu1 %v1445_v12  ;;  %v4348_v12 = vld [vmem:[%s4932_s27] sm:$0xff]  }
 0x3e5   : > { %v1448_v14 = vsel %vm1396_vm4, %v4431_v13, 0.0 }
 0x3e6   : > { %1449 = vadd.xlane.f32.xlu0 %v1448_v14 }
 0x446   : > { %v1405_v22 = vpop.xlane.xlu0 %1404 }
 0x447   : > { %v1423_v23 = vsub.f32 %v1390_v44, %v1405_v22  ;;  %v4352_v22 = vld [vmem:[%s4932_s27 + $0x20] sm:$0xff]  }
 0x449   : > { %v1433_v24 = vmul.f32 1.442695, %v1423_v23 }
 0x44a   : > { %v1408_v25 = vpop.xlane.xlu0 %1407 }
 0x44b   : > { %4432 = vpow2.f32 %v1433_v24  ;;  %v1424_v26 = vsub.f32 %v1391_v46, %v1408_v25  ;;  %v4351_v24 = vld [vmem:[%s4932_s27 + $0x18] sm:$0xff]   ;;  %v4354_v25 = vld [vmem:[%s4932_s27 + $0x28] sm:$0xff]  }
 0x44d   : > { %v1435_v27 = vmul.f32 1.442695, %v1424_v26  ;;  %v4356_v26 = vld [vmem:[%s4932_s27 + $0x30] sm:$0xff]  }
 0x44e   : > { %v1411_v28 = vpop.xlane.xlu1 %1410 }
 0x44f   : > { %4434 = vpow2.f32 %v1435_v27  ;;  %v1425_v29 = vsub.f32 %v1392_v55, %v1411_v28  ;;  %v4358_v27 = vld [vmem:[%s4932_s27 + $0x38] sm:$0xff]  }
 0x450   : > { %v1414_v30 = vpop.xlane.xlu0 %1413 }
 0x451   : > { %v1437_v31 = vmul.f32 1.442695, %v1425_v29  ;;  %v1426_v32 = vsub.f32 %v1393_v57, %v1414_v30 }
 0x453   : > { %4436 = vpow2.f32 %v1437_v31  ;;  %v1439_v33 = vmul.f32 1.442695, %v1426_v32  ;;  %v4353_v31 = vld [vmem:[%s4932_s27 + $0x40] sm:$0xff]  }
 0x455   : > { %v4433_v34 = vpop.eup %4432  ;;  %4438 = vpow2.f32 %v1439_v33 }
 0x456   : > { %v1417_v35 = vpop.xlane.xlu1 %1416  ;;  %v1451_v36 = vsel %vm1396_vm4, %v4433_v34, 0.0 }
 0x457   : > { %v1427_v37 = vsub.f32 %v1394_v1, %v1417_v35  ;;  %1452 = vadd.xlane.f32.xlu1 %v1451_v36  ;;  %v4357_v35 = vld [vmem:[%s4932_s27 + $0x50] sm:$0xff]   ;;  %v4359_v36 = vld [vmem:[%s4932_s27 + $0x58] sm:$0xff]  }
 0x458   : > { %v1420_v38 = vpop.xlane.xlu0 %1419 }
 0x459   : > { %v4435_v39 = vpop.eup %4434  ;;  %v1441_v40 = vmul.f32 1.442695, %v1427_v37  ;;  %v1428_v41 = vsub.f32 %v1395_v3, %v1420_v38 }
 0x45a   : > { %v1454_v42 = vsel %vm1396_vm4, %v4435_v39, 0.0 }
 0x45b   : > { %4440 = vpow2.f32 %v1441_v40  ;;  %v1443_v43 = vmul.f32 1.442695, %v1428_v41  ;;  %1455 = vadd.xlane.f32.xlu0 %v1454_v42  ;;  %v4360_v41 = vld [vmem:[%s4932_s27 + $0x60] sm:$0xff]  }
 0x45d   : > { %v4437_v44 = vpop.eup %4436  ;;  %4442 = vpow2.f32 %v1443_v43 }
 0x45e   : > { %v1457_v45 = vsel %vm1396_vm4, %v4437_v44, 0.0 }
 0x45f   : > { %v4439_v46 = vpop.eup %4438  ;;  %1458 = vadd.xlane.f32.xlu1 %v1457_v45 }
 0x460   : > { %v1460_v47 = vsel %vm1396_vm4, %v4439_v46, 0.0 }
 0x461   : > { %1461 = vadd.xlane.f32.xlu0 %v1460_v47 }
 0x465   : > { %v4441_v48 = vpop.eup %4440 }
 0x466   : > { %v1463_v49 = vsel %vm1396_vm4, %v4441_v48, 0.0 }
 0x467   : > { %v4443_v50 = vpop.eup %4442  ;;  %1464 = vadd.xlane.f32.xlu1 %v1463_v49 }
 0x468   : > { %v1466_v51 = vsel %vm1396_vm4, %v4443_v50, 0.0 }
 0x469   : > { %1467 = vadd.xlane.f32.xlu0 %v1466_v51 }
 0x471   : > { %v1447_v53 = vpop.xlane.xlu1 %1446 }
 0x472   : > { %4444 = vrcp.f32 %v1447_v53 }
 0x473   : > { %v1450_v54 = vpop.xlane.xlu0 %1449 }
 0x474   : > { %4446 = vrcp.f32 %v1450_v54 }
 0x478   : > { %1182 = vrot.lane.b32.xlu1 %v1167_v19, %s4656_s29 }
 0x47c   : > { %v4445_v55 = vpop.eup %4444 }
 0x47d   : > { %v1477_v57 = vmul.f32 %v4445_v55, %v5073_v11 }
 0x47e   : > { %v4447_v56 = vpop.eup %4446 }
 0x47f   : > { %v1478_v58 = vmul.f32 %v4447_v56, %v4431_v13  ;;  %1186 = vrot.lane.b32.xlu0 %v1168_v21, %s4656_s29  ;;  %v4363_v56 = vld [vmem:[%s4932_s27 + $0x78] sm:$0xff]  }
 0x481   : > { %v1485_v59 = vpack.c.bf16 %v1478_v58, %v1477_v57 }
 0x483   : > { %4099 = vmatmul.mubr.msk.bf16.vlgmr.msra.gmra.mrb[8].mxu0 %vm1396_vm4, %v1485_v59 }
 0x484   : > { %4109 = vmatpush3.bf16.msra.mxu0 %v1168_v21  ;;  %4110 = vmatprep.mubr.msk.bf16.mxu0 %vm4655_vm2, %v4654_v52  ;;  %v4350_v21 = vld [vmem:[%s4932_s27 + $0x10] sm:$0xff]  }
 0x485   : > { %4120 = vmatprep.subr.bf16.mxu0 %v4654_v52 }
 0x4e4   : > { %v1453_v60 = vpop.xlane.xlu1 %1452 }
 0x4e8   : > { %v1456_v61 = vpop.xlane.xlu0 %1455 }
 0x4e9   : > { %4448 = vrcp.f32 %v1456_v61 }
 0x4ea   : > { %4450 = vrcp.f32 %v1453_v60 }
 0x4ec   : > { %v1459_v62 = vpop.xlane.xlu1 %1458 }
 0x4ed   : > { %4452 = vrcp.f32 %v1459_v62 }
 0x4ee   : > { %v1462_v63 = vpop.xlane.xlu0 %1461 }
 0x4ef   : > { %4454 = vrcp.f32 %v1462_v63 }
 0x4f3   : > { %v4449_v0 = vpop.eup %4448 }
 0x4f4   : > { %v1465_v1 = vpop.xlane.xlu1 %1464  ;;  %v4451_v2 = vpop.eup %4450  ;;  %v1480_v3 = vmul.f32 %v4449_v0, %v4435_v39 }
 0x4f5   : > { %4456 = vrcp.f32 %v1465_v1  ;;  %v1479_v6 = vmul.f32 %v4451_v2, %v4433_v34  ;;  %v4355_v34 = vld [vmem:[%s4932_s27 + $0x48] sm:$0xff]  }
 0x4f6   : > { %v1468_v4 = vpop.xlane.xlu0 %1467 }
 0x4f7   : > { %v4453_v5 = vpop.eup %4452  ;;  %4458 = vrcp.f32 %v1468_v4  ;;  %v1486_v11 = vpack.c.bf16 %v1480_v3, %v1479_v6 }
 0x4f8   : > { %v1183_v7 = vpop.permute.xlu1 %1182  ;;  %v1481_v9 = vmul.f32 %v4453_v5, %v4437_v44 }
 0x4f9   : > { %v4455_v8 = vpop.eup %4454  ;;  %4103 = vmatpush3.bf16.msra.mxu1 %v1183_v7 }
 0x4fa   : > { %v1482_v10 = vmul.f32 %v4455_v8, %v4439_v46  ;;  %4114 = vmatprep.subr.bf16.mxu1 %v4654_v52  ;;  %v1187_v13 = vpop.permute.xlu0 %1186 }
 0x4fc   : > { %4105 = vmatmul.mubr.msk.bf16.vlgmr.msra.gmra.mrb[20].mxu1 %vm1396_vm4, %v1486_v11  ;;  %v1487_v14 = vpack.c.bf16 %v1482_v10, %v1481_v9 }
 0x4fd   : > { %4115 = vmatpush3.bf16.msra.mxu1 %v1187_v13  ;;  %4116 = vmatprep.mubr.msk.bf16.mxu1 %vm4655_vm2, %v4654_v52 }
 0x4fe   : > { %4111 = vmatmul.mubr.msk.bf16.vlgmr.msra.gmra.mrb[12].mxu0 %vm1396_vm4, %v1487_v14  ;;  %4132 = vmatprep.subr.bf16.mxu1 %v4654_v52  ;;  %v4468_v14 = vld [vmem:[#allocation2] sm:$0xff] }
 0x4ff   : > { %v4457_v15 = vpop.eup %4456  ;;  %4121 = vmatpush3.bf16.msra.mxu0 %v4348_v12  ;;  %4128 = vmatprep.mubr.msk.bf16.mxu0 %vm4655_vm2, %v4654_v52 }
 0x500   : > { %4122 = vmatprep.subr.bf16.mxu0 %v4654_v52  ;;  %v1483_v19 = vmul.f32 %v4457_v15, %v4441_v48  ;;  %v4361_v48 = vld [vmem:[%s4932_s27 + $0x68] sm:$0xff]  }
 0x501   : > { %v4459_v17 = vpop.eup %4458 }
 0x502   : > { %v1484_v20 = vmul.f32 %v4459_v17, %v4443_v50  ;;  %v4362_v50 = vld [vmem:[%s4932_s27 + $0x70] sm:$0xff]  }
 0x503   : > { %4123 = vmatpush3.bf16.msra.mxu0 %v4349_v16  ;;  %v4469_v16 = vld [vmem:[#allocation2 + $0x8] sm:$0xff] }
 0x504   : > { %v1488_v23 = vpack.c.bf16 %v1484_v20, %v1483_v19  ;;  %4124 = vmatprep.subr.bf16.mxu0 %v4654_v52  ;;  %v2023_v19 = vld [vmem:[%s4914_s20] sm:$0xff] }
 0x505   : > { %v2027_v20 = vld [vmem:[%s4914_s20 + $0x20] sm:$0xff] }
 0x506   : > { %4117 = vmatmul.mubr.msk.bf16.vlgmr.msra.gmra.mrb[24].mxu1 %vm1396_vm4, %v1488_v23  ;;  %v3772_v23 = vcombine.high %v2023_v19, %v2027_v20 }
 0x507   : > { %4125 = vmatpush3.bf16.msra.mxu0 %v4350_v21  ;;  %4133 = vmatpush3.bf16.msra.mxu1 %v4352_v22  ;;  %v2024_v21 = vld [vmem:[%s4914_s20 + $0x8] sm:$0xff]  ;;  %v3771_v22 = vcombine.low %v2023_v19, %v2027_v20  ;;  %v2079_v20 = vld [vmem:[%s4914_s20 + $0x1c0] sm:$0xff] }
 0x508   : > { %4126 = vmatprep.subr.bf16.mxu0 %v4654_v52  ;;  %4134 = vmatprep.subr.bf16.mxu1 %v4654_v52 }
 0x509   : > { %4140 = vmatprep.mubr.msk.bf16.mxu1 %vm4655_vm2, %v4654_v52 }
 0x50b   : > { %4127 = vmatpush3.bf16.msra.mxu0 %v4351_v24  ;;  %4135 = vmatpush3.bf16.msra.mxu1 %v4354_v25  ;;  %v2028_v24 = vld [vmem:[%s4914_s20 + $0x28] sm:$0xff]  ;;  %v2031_v25 = vld [vmem:[%s4914_s20 + $0x40] sm:$0xff] }
 0x50c   : > { %4144 = vmatprep.subr.bf16.mxu0 %v4654_v52  ;;  %4136 = vmatprep.subr.bf16.mxu1 %v4654_v52 }
 0x50f   : > { %4137 = vmatpush3.bf16.msra.mxu1 %v4356_v26  ;;  %v2035_v26 = vld [vmem:[%s4914_s20 + $0x60] sm:$0xff] }
 0x510   : > { %4138 = vmatprep.subr.bf16.mxu1 %v4654_v52 }
 0x513   : > { %4139 = vmatpush3.bf16.msra.mxu1 %v4358_v27  ;;  %v3773_v27 = vcombine.low %v2024_v21, %v2028_v24 }
 0x514   : > { %4156 = vmatprep.subr.bf16.mxu1 %v4654_v52 }
 0x556   : > { %v1526_v28 = vpop.f32.mrb[8].mxu0 }
 0x557   : > { %v4100_v29 = vpop.f32.mrb[9].mxu0 }
 0x558   : > { %v1529_v30 = vpop.f32.mrb[10].mxu0  ;;  %v3780_v29 = vcombine.high %v2031_v25, %v2035_v26 }
 0x559   : > { %v1665_v32 = vpack.c.bf16 %v1529_v30, %v1526_v28  ;;  %v4101_v33 = vpop.f32.mrb[11].mxu0  ;;  %v3774_v28 = vcombine.high %v2024_v21, %v2028_v24  ;;  %v2032_v30 = vld [vmem:[%s4914_s20 + $0x48] sm:$0xff]  ;;  %v2083_v21 = vld [vmem:[%s4914_s20 + $0x1e0] sm:$0xff] }
 0x55a   : > { %v3779_v33 = vcombine.low %v2031_v25, %v2035_v26  ;;  %v3828_v24 = vcombine.high %v2079_v20, %v2083_v21  ;;  %v2084_v25 = vld [vmem:[%s4914_s20 + $0x1e8] sm:$0xff]  ;;  %v2025_v26 = vld [vmem:[%s4914_s20 + $0x10] sm:$0xff] }
 0x55b   : > { %4129 = vmatmul.mubr.msk.bf16.vlgmr.msra.gmra.mrb[16].mxu0 %vm1189_vm3, %v1665_v32 }
 0x55c   : > { %4145 = vmatpush3.bf16.msra.mxu0 %v4353_v31  ;;  %4152 = vmatprep.mubr.msk.bf16.mxu0 %vm4655_vm2, %v4654_v52  ;;  %v2036_v31 = vld [vmem:[%s4914_s20 + $0x68] sm:$0xff] }
 0x55d   : > { %4146 = vmatprep.subr.bf16.mxu0 %v4654_v52  ;;  %v3782_v32 = vcombine.high %v2032_v30, %v2036_v31 }
 0x560   : > { %4147 = vmatpush3.bf16.msra.mxu0 %v4355_v34  ;;  %v3781_v34 = vcombine.low %v2032_v30, %v2036_v31 }
 0x561   : > { %4148 = vmatprep.subr.bf16.mxu0 %v4654_v52 }
 0x564   : > { %4149 = vmatpush3.bf16.msra.mxu0 %v4357_v35 }
 0x565   : > { %4150 = vmatprep.subr.bf16.mxu0 %v4654_v52 }
 0x568   : > { %4151 = vmatpush3.bf16.msra.mxu0 %v4359_v36 }
 0x569   : > { %2407 = vmatprep.subr.bf16.mxu0 %v3772_v23  ;;  %v3827_v23 = vcombine.low %v2079_v20, %v2083_v21  ;;  %v2069_v20 = vld [vmem:[%s4914_s20 + $0x170] sm:$0xff]  ;;  %v2066_v21 = vld [vmem:[%s4914_s20 + $0x158] sm:$0xff] }
 0x5cf   : > { %v1570_v37 = vpop.f32.mrb[20].mxu1 }
 0x5d0   : > { %v4106_v38 = vpop.f32.mrb[21].mxu1 }
 0x5d1   : > { %v1573_v39 = vpop.f32.mrb[22].mxu1  ;;  %v1614_v40 = vpop.f32.mrb[12].mxu0 }
 0x5d2   : > { %v1666_v42 = vpack.c.bf16 %v1573_v39, %v1570_v37  ;;  %v4107_v43 = vpop.f32.mrb[23].mxu1  ;;  %v4112_v44 = vpop.f32.mrb[13].mxu0 }
 0x5d3   : > { %v1617_v45 = vpop.f32.mrb[14].mxu0  ;;  %v2039_v43 = vld [vmem:[%s4914_s20 + $0x80] sm:$0xff] }
 0x5d4   : > { %v1667_v46 = vpack.c.bf16 %v1617_v45, %v1614_v40  ;;  %v4113_v47 = vpop.f32.mrb[15].mxu0  ;;  %4141 = vmatmul.mubr.msk.bf16.vlgmr.msra.gmra.mrb[28].mxu1 %vm1189_vm3, %v1666_v42  ;;  %v2043_v44 = vld [vmem:[%s4914_s20 + $0xa0] sm:$0xff]  ;;  %v2040_v45 = vld [vmem:[%s4914_s20 + $0x88] sm:$0xff] }
 0x5d5   : > { %4157 = vmatpush3.bf16.msra.mxu1 %v4360_v41  ;;  %4164 = vmatprep.mubr.msk.bf16.mxu1 %vm4655_vm2, %v4654_v52  ;;  %v2044_v47 = vld [vmem:[%s4914_s20 + $0xa8] sm:$0xff] }
 0x5d6   : > { %4153 = vmatmul.mubr.msk.bf16.vlgmr.msra.gmra.mrb[20].mxu0 %vm1189_vm3, %v1667_v46  ;;  %4158 = vmatprep.subr.bf16.mxu1 %v4654_v52  ;;  %v3788_v46 = vcombine.high %v2039_v43, %v2043_v44 }
 0x5d7   : > { %2439 = vmatprep.mubr.bf16.mxu0 %v4653_v18  ;;  %2408 = vmatpush1.bf16.msra.mxu0 %v3771_v22  ;;  %v2080_v22 = vld [vmem:[%s4914_s20 + $0x1c8] sm:$0xff] }
 0x5d8   : > { %2409 = vmatprep.subr.bf16.mxu0 %v3780_v29  ;;  %v3830_v29 = vcombine.high %v2080_v22, %v2084_v25 }
 0x5d9   : > { %4159 = vmatpush3.bf16.msra.mxu1 %v4361_v48  ;;  %v1658_v49 = vpop.f32.mrb[24].mxu1  ;;  %v3787_v48 = vcombine.low %v2039_v43, %v2043_v44 }
 0x5da   : > { %v4118_v51 = vpop.f32.mrb[25].mxu1  ;;  %4160 = vmatprep.subr.bf16.mxu1 %v4654_v52 }
 0x5db   : > { %v1661_v53 = vpop.f32.mrb[26].mxu1  ;;  %2410 = vmatpush1.bf16.msra.mxu0 %v3779_v33  ;;  %v2047_v51 = vld [vmem:[%s4914_s20 + $0xc0] sm:$0xff]  ;;  %v2030_v33 = vld [vmem:[%s4914_s20 + $0x38] sm:$0xff] }
 0x5dc   : > { %v1668_v54 = vpack.c.bf16 %v1661_v53, %v1658_v49  ;;  %v4119_v55 = vpop.f32.mrb[27].mxu1  ;;  %v3789_v49 = vcombine.low %v2040_v45, %v2044_v47  ;;  %2411 = vmatprep.subr.bf16.mxu0 %v3788_v46  ;;  %v2051_v53 = vld [vmem:[%s4914_s20 + $0xe0] sm:$0xff] }
 0x5dd   : > { %4161 = vmatpush3.bf16.msra.mxu1 %v4362_v50  ;;  %v3790_v50 = vcombine.high %v2040_v45, %v2044_v47  ;;  %v3796_v55 = vcombine.high %v2047_v51, %v2051_v53  ;;  %v3769_v45 = vld [vmem:[%s644_s28] ss:$0 sm:$0xff] }
 0x5de   : > { %4162 = vmatprep.subr.bf16.mxu1 %v4654_v52 }
 0x5df   : > { %2412 = vmatpush1.bf16.msra.mxu0 %v3787_v48 }
 0x5e0   : > { %2413 = vmatprep.subr.bf16.mxu0 %v3796_v55  ;;  %v2034_v55 = vld [vmem:[%s4914_s20 + $0x58] sm:$0xff] }
 0x5e1   : > { %4163 = vmatpush3.bf16.msra.mxu1 %v4363_v56  ;;  %v2052_v56 = vld [vmem:[%s4914_s20 + $0xe8] sm:$0xff] }
 0x5e2   : > { %2450 = vmatprep.subr.bf16.mxu1 %v3774_v28  ;;  %v3829_v28 = vcombine.low %v2080_v22, %v2084_v25  ;;  %v2070_v22 = vld [vmem:[%s4914_s20 + $0x178] sm:$0xff] }
 0x5e4   : > { %4165 = vmatmul.mubr.msk.bf16.vlgmr.msra.gmra.mrb[32].mxu1 %vm1189_vm3, %v1668_v54  ;;  %v2048_v54 = vld [vmem:[%s4914_s20 + $0xc8] sm:$0xff] }
 0x5e5   : > { %2482 = vmatprep.mubr.bf16.mxu1 %v4653_v18  ;;  %2451 = vmatpush1.bf16.msra.mxu1 %v3773_v27  ;;  %v2029_v27 = vld [vmem:[%s4914_s20 + $0x30] sm:$0xff] }
 0x5e6   : > { %2452 = vmatprep.subr.bf16.mxu1 %v3782_v32  ;;  %v3775_v30 = vcombine.low %v2025_v26, %v2029_v27  ;;  %v3776_v31 = vcombine.high %v2025_v26, %v2029_v27  ;;  %v2026_v32 = vld [vmem:[%s4914_s20 + $0x18] sm:$0xff]  ;;  %v3818_v26 = vcombine.high %v2066_v21, %v2070_v22  ;;  %v2073_v27 = vld [vmem:[%s4914_s20 + $0x190] sm:$0xff] }
 0x5e9   : > { %2453 = vmatpush1.bf16.msra.mxu1 %v3781_v34  ;;  %v3777_v34 = vcombine.low %v2026_v32, %v2030_v33 }
 0x5ea   : > { %2454 = vmatprep.subr.bf16.mxu1 %v3790_v50  ;;  %v3770_v50 = vld [vmem:[%s647_s24] ss:$0 sm:$0xff] }
 0x5ed   : > { %2455 = vmatpush1.bf16.msra.mxu1 %v3789_v49 }
 0x62e   : > { %v1762_v57 = vpop.f32.mrb[16].mxu0 }
 0x62f   : > { %v4130_v58 = vpop.f32.mrb[17].mxu0 }
 0x630   : > { %v1765_v59 = vpop.f32.mrb[18].mxu0  ;;  %v3797_v58 = vcombine.low %v2048_v54, %v2052_v56 }
 0x631   : > { %v4131_v60 = vpop.f32.mrb[19].mxu0 }
 0x632   : > { %v2055_v60 = vld [vmem:[%s4914_s20 + $0x100] sm:$0xff] }
 0x6a7   : > { %v1830_v61 = vpop.f32.mrb[28].mxu1 }
 0x6a8   : > { %v1973_v62 = vadd.f32 %v1830_v61, %v1762_v57  ;;  %v4142_v63 = vpop.f32.mrb[29].mxu1  ;;  %v3795_v57 = vcombine.low %v2047_v51, %v2051_v53  ;;  %v2059_v61 = vld [vmem:[%s4914_s20 + $0x120] sm:$0xff]  ;;  %v2033_v53 = vld [vmem:[%s4914_s20 + $0x50] sm:$0xff] }
 0x6a9   : > { %v1833_v0 = vpop.f32.mrb[30].mxu1  ;;  %v1898_v1 = vpop.f32.mrb[20].mxu0  ;;  %v3804_v63 = vcombine.high %v2055_v60, %v2059_v61 }
 0x6aa   : > { %v1976_v2 = vadd.f32 %v1833_v0, %v1765_v59  ;;  %v1974_v3 = vadd.f32 %v1973_v62, %v1898_v1  ;;  %v4143_v4 = vpop.f32.mrb[31].mxu1  ;;  %v4154_v5 = vpop.f32.mrb[21].mxu0  ;;  %v3798_v59 = vcombine.high %v2048_v54, %v2052_v56  ;;  %2414 = vmatpush1.bf16.msra.mxu0 %v3795_v57  ;;  %v2056_v62 = vld [vmem:[%s4914_s20 + $0x108] sm:$0xff]  ;;  %v3803_v1 = vcombine.low %v2055_v60, %v2059_v61  ;;  %v2037_v54 = vld [vmem:[%s4914_s20 + $0x70] sm:$0xff]  ;;  %v2038_v56 = vld [vmem:[%s4914_s20 + $0x78] sm:$0xff] }
 0x6ab   : > { %v1901_v52 = vpop.f32.mrb[22].mxu0  ;;  %v2060_v0 = vld [vmem:[%s4914_s20 + $0x128] sm:$0xff]  ;;  %2415 = vmatprep.subr.bf16.mxu0 %v3804_v63  ;;  %v2063_v4 = vld [vmem:[%s4914_s20 + $0x140] sm:$0xff]  ;;  %v2041_v60 = vld [vmem:[%s4914_s20 + $0x90] sm:$0xff] }
 0x6ac   : > { %v1977_v6 = vadd.f32 %v1976_v2, %v1901_v52  ;;  %v4155_v7 = vpop.f32.mrb[23].mxu0  ;;  %2456 = vmatprep.subr.bf16.mxu1 %v3798_v59  ;;  %v3805_v2 = vcombine.low %v2056_v62, %v2060_v0  ;;  %v2067_v5 = vld [vmem:[%s4914_s20 + $0x160] sm:$0xff]  ;;  %v2064_v52 = vld [vmem:[%s4914_s20 + $0x148] sm:$0xff]  ;;  %v3786_v59 = vcombine.high %v2034_v55, %v2038_v56  ;;  %v2045_v61 = vld [vmem:[%s4914_s20 + $0xb0] sm:$0xff] }
 0x6ad   : > { %2457 = vmatpush1.bf16.msra.mxu1 %v3797_v58  ;;  %v2068_v7 = vld [vmem:[%s4914_s20 + $0x168] sm:$0xff]  ;;  %v2046_v63 = vld [vmem:[%s4914_s20 + $0xb8] sm:$0xff] }
 0x6ae   : > { %2416 = vmatpush1.bf16.msra.mxu0 %v3803_v1  ;;  %v3785_v1 = vcombine.low %v2034_v55, %v2038_v56  ;;  %v4371_v55 = vld [vmem:[%s4946_s10 + $0x88] sm:$0xff]   ;;  %v4372_v56 = vld [vmem:[%s4946_s10 + $0x50] sm:$0xff]  }
 0x6b7   : > { %v1966_v8 = vpop.f32.mrb[32].mxu1 }
 0x6b8   : > { %v1975_v9 = vadd.f32 %v1974_v3, %v1966_v8  ;;  %v4166_v10 = vpop.f32.mrb[33].mxu1  ;;  %v3806_v3 = vcombine.high %v2056_v62, %v2060_v0  ;;  %v3811_v8 = vcombine.low %v2063_v4, %v2067_v5  ;;  %v2042_v62 = vld [vmem:[%s4914_s20 + $0x98] sm:$0xff]  ;;  %v3783_v0 = vcombine.low %v2033_v53, %v2037_v54 }
 0x6b9   : > { %v1969_v11 = vpop.f32.mrb[34].mxu1  ;;  %v3814_v10 = vcombine.high %v2064_v52, %v2068_v7 }
 0x6ba   : > { %v1978_v12 = vadd.f32 %v1977_v6, %v1969_v11  ;;  %v4167_v13 = vpop.f32.mrb[35].mxu1  ;;  %v1979_v15 = vadd.f32 %v4468_v14, %v1975_v9  ;;  %2458 = vmatprep.subr.bf16.mxu1 %v3806_v3  ;;  %v3812_v6 = vcombine.high %v2063_v4, %v2067_v5  ;;  %v3813_v9 = vcombine.low %v2064_v52, %v2068_v7  ;;  %v2071_v11 = vld [vmem:[%s4914_s20 + $0x180] sm:$0xff]  ;;  %v2049_v4 = vld [vmem:[%s4914_s20 + $0xd0] sm:$0xff]  ;;  %v2050_v52 = vld [vmem:[%s4914_s20 + $0xd8] sm:$0xff] }
 0x6bb   : > { %2459 = vmatpush1.bf16.msra.mxu1 %v3805_v2  ;;  %v2072_v13 = vld [vmem:[%s4914_s20 + $0x188] sm:$0xff]  ;;  %v3792_v2 = vcombine.high %v2041_v60, %v2045_v61  ;;  %v3794_v3 = vcombine.high %v2042_v62, %v2046_v63  ;;  %v2053_v5 = vld [vmem:[%s4914_s20 + $0xf0] sm:$0xff]  ;;  %v3791_v7 = vcombine.low %v2041_v60, %v2045_v61  ;;  %v4377_v61 = vld [vmem:[%s4946_s10 + $0xd8] sm:$0xff]  }
 0x6bc   : > { %1983 = vadd.xlane.f32.xlu1 %v1979_v15  ;;  %v1980_v17 = vadd.f32 %v4469_v16, %v1978_v12  ;;  %2417 = vmatprep.subr.bf16.mxu0 %v3812_v6  ;;  %v2075_v12 = vld [vmem:[%s4914_s20 + $0x1a0] sm:$0xff]  ;;  %v2054_v6 = vld [vmem:[%s4914_s20 + $0xf8] sm:$0xff]  ;;  %v4375_v60 = vld [vmem:[%s4946_s10 + $0x90] sm:$0xff]  }
 0x6bd   : > { %2460 = vmatprep.subr.bf16.mxu1 %v3814_v10  ;;  %2418 = vmatpush1.bf16.msra.mxu0 %v3811_v8  ;;  %v3820_v14 = vcombine.high %v2071_v11, %v2075_v12  ;;  %v3819_v16 = vcombine.low %v2071_v11, %v2075_v12  ;;  %v3793_v8 = vcombine.low %v2042_v62, %v2046_v63  ;;  %v2057_v11 = vld [vmem:[%s4914_s20 + $0x110] sm:$0xff]  ;;  %v4378_v62 = vld [vmem:[%s4946_s10 + $0x18] sm:$0xff]  }
 0x6be   : > { %1985 = vadd.xlane.f32.xlu0 %v1980_v17  ;;  %v3802_v10 = vcombine.high %v2050_v52, %v2054_v6  ;;  %v2061_v12 = vld [vmem:[%s4914_s20 + $0x130] sm:$0xff]  ;;  %v4379_v63 = vld [vmem:[%s4946_s10 + $0x98] sm:$0xff]  }
 0x6bf   : > { %2461 = vmatpush1.bf16.msra.mxu1 %v3813_v9  ;;  %2419 = vmatprep.subr.bf16.mxu0 %v3820_v14  ;;  %v3800_v9 = vcombine.high %v2049_v4, %v2053_v5  ;;  %v2062_v14 = vld [vmem:[%s4914_s20 + $0x138] sm:$0xff] }
 0x6c1   : > { %2420 = vmatpush1.bf16.msra.mxu0 %v3819_v16  ;;  %v3808_v16 = vcombine.high %v2057_v11, %v2061_v12 }
 0x6c2   : > { %2421 = vmatprep.subr.bf16.mxu0 %v3828_v24 }
 0x6c5   : > { %2422 = vmatpush1.bf16.msra.mxu0 %v3827_v23  ;;  %v3807_v23 = vcombine.low %v2057_v11, %v2061_v12  ;;  %v4392_v11 = vld [vmem:[%s4946_s10 + $0x78] sm:$0xff]  }
 0x6c6   : > { %2493 = vmatprep.subr.bf16.mxu0 %v3776_v31  ;;  %v4393_v12 = vld [vmem:[%s4946_s10 + $0xf8] sm:$0xff]  }
 0x749   : > { %v1984_v35 = vpop.xlane.xlu1 %1983 }
 0x74a   : > { %v1988_v36 = vmul.f32 0.0078125, %v1984_v35  ;;  %v3778_v35 = vcombine.high %v2026_v32, %v2030_v33  ;;  %v3817_v32 = vcombine.low %v2066_v21, %v2070_v22 }
 0x74b   : > { %v1986_v37 = vpop.xlane.xlu0 %1985 }
 0x74c   : > { %v5151_v38 = vsub.f32 %v1979_v15, %v1988_v36  ;;  %v1989_v39 = vmul.f32 0.0078125, %v1986_v37  ;;  %v2076_v15 = vld [vmem:[%s4914_s20 + $0x1a8] sm:$0xff] }
 0x74d   : > { %v3822_v19 = vcombine.high %v2072_v13, %v2076_v15 }
 0x74e   : > { %v5153_v40 = vsub.f32 %v1980_v17, %v1989_v39  ;;  %v1992_v41 = vmul.f32 %v5151_v38, %v5151_v38  ;;  %v3821_v17 = vcombine.low %v2072_v13, %v2076_v15  ;;  %v2058_v13 = vld [vmem:[%s4914_s20 + $0x118] sm:$0xff]  ;;  %v3799_v15 = vcombine.low %v2049_v4, %v2053_v5  ;;  %v4384_v4 = vld [vmem:[%s4946_s10 + $0x68] sm:$0xff]  }
 0x74f   : > { %2462 = vmatprep.subr.bf16.mxu1 %v3822_v19  ;;  %v2065_v19 = vld [vmem:[%s4914_s20 + $0x150] sm:$0xff]  ;;  %v3809_v24 = vcombine.low %v2058_v13, %v2062_v14  ;;  %v4385_v5 = vld [vmem:[%s4946_s10 + $0xe8] sm:$0xff]  }
 0x750   : > { %1994 = vadd.xlane.f32.xlu1 %v1992_v41  ;;  %v1993_v42 = vmul.f32 %v5153_v40, %v5153_v40  ;;  %2463 = vmatpush1.bf16.msra.mxu1 %v3821_v17  ;;  %v3810_v17 = vcombine.high %v2058_v13, %v2062_v14  ;;  %v3816_v25 = vcombine.high %v2065_v19, %v2069_v20  ;;  %v4394_v13 = vld [vmem:[%s4946_s10 + $0x38] sm:$0xff]  }
 0x751   : > { %2464 = vmatprep.subr.bf16.mxu1 %v3830_v29  ;;  %v2074_v29 = vld [vmem:[%s4914_s20 + $0x198] sm:$0xff]  ;;  %v3815_v31 = vcombine.low %v2065_v19, %v2069_v20 }
 0x752   : > { %1996 = vadd.xlane.f32.xlu0 %v1993_v42  ;;  %v4395_v14 = vld [vmem:[%s4946_s10 + $0xb8] sm:$0xff]  }
 0x754   : > { %2465 = vmatpush1.bf16.msra.mxu1 %v3829_v28  ;;  %v2077_v28 = vld [vmem:[%s4914_s20 + $0x1b0] sm:$0xff] }
 0x755   : > { %2536 = vmatprep.subr.bf16.mxu1 %v3778_v35  ;;  %v3824_v33 = vcombine.high %v2073_v27, %v2077_v28  ;;  %v2081_v35 = vld [vmem:[%s4914_s20 + $0x1d0] sm:$0xff] }
 0x7dd   : > { %v1995_v36 = vpop.xlane.xlu1 %1994 }
 0x7de   : > { %v1998_v37 = vmul.f32 0.0078125, %v1995_v36  ;;  %v2085_v36 = vld [vmem:[%s4914_s20 + $0x1f0] sm:$0xff] }
 0x7df   : > { %v1997_v39 = vpop.xlane.xlu0 %1996 }
 0x7e0   : > { %v2000_v41 = vadd.f32 1e-06, %v1998_v37  ;;  %v1999_v42 = vmul.f32 0.0078125, %v1997_v39  ;;  %v2082_v37 = vld [vmem:[%s4914_s20 + $0x1d8] sm:$0xff] }
 0x7e1   : > { %v2086_v39 = vld [vmem:[%s4914_s20 + $0x1f8] sm:$0xff] }
 0x7e2   : > { %4460 = vrsqrt.f32 %v2000_v41  ;;  %v2001_v43 = vadd.f32 1e-06, %v1999_v42  ;;  %v3823_v41 = vcombine.low %v2073_v27, %v2077_v28 }
 0x7e4   : > { %4462 = vrsqrt.f32 %v2001_v43  ;;  %v3832_v43 = vcombine.high %v2081_v35, %v2085_v36 }
 0x7ec   : > { %v4461_v44 = vpop.eup %4460 }
 0x7ed   : > { %v2004_v46 = vmul.f32 %v4461_v44, %v5151_v38  ;;  %v3834_v44 = vcombine.high %v2082_v37, %v2086_v39 }
 0x7ee   : > { %v4463_v47 = vpop.eup %4462 }
 0x7ef   : > { %v2005_v48 = vmul.f32 %v4463_v47, %v5153_v40  ;;  %v2012_v49 = vmul.f32 %v3769_v45, %v2004_v46  ;;  %v3784_v40 = vcombine.high %v2033_v53, %v2037_v54  ;;  %v3833_v46 = vcombine.low %v2082_v37, %v2086_v39  ;;  %v4364_v47 = vld [vmem:[%s4946_s10 + $0x40] sm:$0xff]   ;;  %v4369_v53 = vld [vmem:[%s4946_s10 + $0xc8] sm:$0xff]  }
 0x7f0   : > { %v4370_v54 = vld [vmem:[%s4946_s10 + $0x8] sm:$0xff]   ;;  %v4398_v37 = vld [vmem:[%s4946_s10 + $0x100] sm:$0xff]  }
 0x7f1   : > { %v2013_v51 = vmul.f32 %v3769_v45, %v2005_v48  ;;  %v5203_v57 = vadd.f32 %v3770_v50, %v2012_v49  ;;  %v3831_v45 = vcombine.low %v2081_v35, %v2085_v36  ;;  %v4365_v48 = vld [vmem:[%s4946_s10 + $0xc0] sm:$0xff]  }
 0x7f2   : > { %v4366_v49 = vld [vmem:[%s4946_s10] sm:$0xff]  }
 0x7f3   : > { %v5205_v38 = vadd.f32 %v3770_v50, %v2013_v51  ;;  %v4367_v50 = vld [vmem:[%s4946_s10 + $0x80] sm:$0xff]   ;;  %v4368_v51 = vld [vmem:[%s4946_s10 + $0x48] sm:$0xff]  }
 0x7f4   : > { %v4399_v39 = vld [vmem:[%s4946_s10 + $0x180] sm:$0xff]  }
 0x7f5   : > { %v5209_v58 = vpack.c.bf16 %v5205_v38, %v5203_v57 }
 0x7f7   : > { %2440 = vmatmul.mubr.bf16.vlgmr.msra.gmra.mrb[24].mxu0 %v5209_v58  ;;  %2483 = vmatmul.mubr.bf16.vlgmr.msra.gmra.mrb[36].mxu1 %v5209_v58 }
 0x7f8   : > { %2494 = vmatpush1.bf16.msra.mxu0 %v3775_v30  ;;  %2537 = vmatpush1.bf16.msra.mxu1 %v3777_v34  ;;  %v2078_v30 = vld [vmem:[%s4914_s20 + $0x1b8] sm:$0xff] }
 0x7f9   : > { %2495 = vmatprep.subr.bf16.mxu0 %v3784_v40  ;;  %2538 = vmatprep.subr.bf16.mxu1 %v3786_v59  ;;  %v3826_v34 = vcombine.high %v2074_v29, %v2078_v30  ;;  %v3825_v42 = vcombine.low %v2074_v29, %v2078_v30  ;;  %v4373_v40 = vld [vmem:[%s4946_s10 + $0xd0] sm:$0xff]  }
 0x7fa   : > { %2525 = vmatprep.mubr.bf16.mxu0 %v4653_v18  ;;  %2568 = vmatprep.mubr.bf16.mxu1 %v4653_v18  ;;  %v3801_v18 = vcombine.low %v2050_v52, %v2054_v6  ;;  %v4374_v59 = vld [vmem:[%s4946_s10 + $0x10] sm:$0xff]   ;;  %v4386_v52 = vld [vmem:[%s4946_s10 + $0x28] sm:$0xff]  }
 0x7fb   : > { %v4387_v6 = vld [vmem:[%s4946_s10 + $0xa8] sm:$0xff]  }
 0x7fc   : > { %2496 = vmatpush1.bf16.msra.mxu0 %v3783_v0  ;;  %2539 = vmatpush1.bf16.msra.mxu1 %v3785_v1  ;;  %v4380_v0 = vld [vmem:[%s4946_s10 + $0x60] sm:$0xff]  }
 0x7fd   : > { %2497 = vmatprep.subr.bf16.mxu0 %v3792_v2  ;;  %2540 = vmatprep.subr.bf16.mxu1 %v3794_v3  ;;  %v4381_v1 = vld [vmem:[%s4946_s10 + $0xe0] sm:$0xff]  }
 0x7fe   : > { %v4382_v2 = vld [vmem:[%s4946_s10 + $0x20] sm:$0xff]  }
 0x7ff   : > { %v4383_v3 = vld [vmem:[%s4946_s10 + $0xa0] sm:$0xff]  }
 0x800   : > { %2498 = vmatpush1.bf16.msra.mxu0 %v3791_v7  ;;  %2541 = vmatpush1.bf16.msra.mxu1 %v3793_v8  ;;  %v4388_v7 = vld [vmem:[%s4946_s10 + $0x70] sm:$0xff]  }
 0x801   : > { %2499 = vmatprep.subr.bf16.mxu0 %v3800_v9  ;;  %2542 = vmatprep.subr.bf16.mxu1 %v3802_v10  ;;  %v4389_v8 = vld [vmem:[%s4946_s10 + $0xf0] sm:$0xff]  }
 0x802   : > { %v4390_v9 = vld [vmem:[%s4946_s10 + $0x30] sm:$0xff]  }
 0x803   : > { %v4391_v10 = vld [vmem:[%s4946_s10 + $0xb0] sm:$0xff]  }
 0x804   : > { %2500 = vmatpush1.bf16.msra.mxu0 %v3799_v15  ;;  %2543 = vmatpush1.bf16.msra.mxu1 %v3801_v18  ;;  %v4396_v15 = vld [vmem:[%s4946_s10 + $0x140] sm:$0xff]  }
 0x805   : > { %2501 = vmatprep.subr.bf16.mxu0 %v3808_v16  ;;  %2544 = vmatprep.subr.bf16.mxu1 %v3810_v17  ;;  %v4397_v18 = vld [vmem:[%s4946_s10 + $0x1c0] sm:$0xff]  }
 0x808   : > { %2502 = vmatpush1.bf16.msra.mxu0 %v3807_v23  ;;  %2545 = vmatpush1.bf16.msra.mxu1 %v3809_v24 }
 0x809   : > { %2503 = vmatprep.subr.bf16.mxu0 %v3816_v25  ;;  %2546 = vmatprep.subr.bf16.mxu1 %v3818_v26 }
 0x80c   : > { %2504 = vmatpush1.bf16.msra.mxu0 %v3815_v31  ;;  %2547 = vmatpush1.bf16.msra.mxu1 %v3817_v32 }
 0x80d   : > { %2505 = vmatprep.subr.bf16.mxu0 %v3824_v33  ;;  %2548 = vmatprep.subr.bf16.mxu1 %v3826_v34 }
 0x810   : > { %2506 = vmatpush1.bf16.msra.mxu0 %v3823_v41  ;;  %2549 = vmatpush1.bf16.msra.mxu1 %v3825_v42  ;;  %v4400_v41 = vld [vmem:[%s4946_s10 + $0x148] sm:$0xff]  }
 0x811   : > { %2507 = vmatprep.subr.bf16.mxu0 %v3832_v43  ;;  %2550 = vmatprep.subr.bf16.mxu1 %v3834_v44  ;;  %v4401_v42 = vld [vmem:[%s4946_s10 + $0x1c8] sm:$0xff]  }
 0x812   : > { %v4402_v43 = vld [vmem:[%s4946_s10 + $0x108] sm:$0xff]  }
 0x813   : > { %v4403_v44 = vld [vmem:[%s4946_s10 + $0x188] sm:$0xff]  }
 0x814   : > { %2508 = vmatpush1.bf16.msra.mxu0 %v3831_v45  ;;  %2551 = vmatpush1.bf16.msra.mxu1 %v3833_v46  ;;  %v4404_v45 = vld [vmem:[%s4946_s10 + $0x150] sm:$0xff]  }
 0x815   : > { %3960 = vmatprep.subr.bf16.mxu0 %v4364_v47  ;;  %3982 = vmatprep.subr.bf16.mxu1 %v4365_v48  ;;  %v4405_v46 = vld [vmem:[%s4946_s10 + $0x1d0] sm:$0xff]  }
 0x816   : > { %v4406_v47 = vld [vmem:[%s4946_s10 + $0x110] sm:$0xff]  }
 0x817   : > { %2526 = vmatmul.mubr.bf16.vlgmr.msra.gmra.mrb[28].mxu0 %v5209_v58  ;;  %2569 = vmatmul.mubr.bf16.vlgmr.msra.gmra.mrb[40].mxu1 %v5209_v58  ;;  %v4376_v58 = vld [vmem:[%s4946_s10 + $0x58] sm:$0xff]   ;;  %v4407_v48 = vld [vmem:[%s4946_s10 + $0x190] sm:$0xff]  }
 0x818   : > { %3961 = vmatpush3.bf16.msra.mxu0 %v4366_v49  ;;  %3983 = vmatpush3.bf16.msra.mxu1 %v4367_v50  ;;  %v4408_v49 = vld [vmem:[%s4946_s10 + $0x158] sm:$0xff]  }
 0x819   : > { %3962 = vmatprep.subr.bf16.mxu0 %v4368_v51  ;;  %3984 = vmatprep.subr.bf16.mxu1 %v4369_v53  ;;  %v4409_v50 = vld [vmem:[%s4946_s10 + $0x1d8] sm:$0xff]  }
 0x81a   : > { %v4410_v51 = vld [vmem:[%s4946_s10 + $0x118] sm:$0xff]  }
 0x81b   : > { %v4411_v53 = vld [vmem:[%s4946_s10 + $0x198] sm:$0xff]  }
 0x81c   : > { %3963 = vmatpush3.bf16.msra.mxu0 %v4370_v54  ;;  %3985 = vmatpush3.bf16.msra.mxu1 %v4371_v55  ;;  %v4412_v54 = vld [vmem:[%s4946_s10 + $0x160] sm:$0xff]  }
 0x81d   : > { %3964 = vmatprep.subr.bf16.mxu0 %v4372_v56  ;;  %3986 = vmatprep.subr.bf16.mxu1 %v4373_v40  ;;  %v4413_v55 = vld [vmem:[%s4946_s10 + $0x1e0] sm:$0xff]  }
 0x81e   : > { %v4414_v56 = vld [vmem:[%s4946_s10 + $0x120] sm:$0xff]  }
 0x81f   : > { %v4415_v40 = vld [vmem:[%s4946_s10 + $0x1a0] sm:$0xff]  }
 0x820   : > { %3965 = vmatpush3.bf16.msra.mxu0 %v4374_v59  ;;  %3987 = vmatpush3.bf16.msra.mxu1 %v4375_v60  ;;  %v4416_v59 = vld [vmem:[%s4946_s10 + $0x168] sm:$0xff]  }
 0x821   : > { %3966 = vmatprep.subr.bf16.mxu0 %v4376_v58  ;;  %3988 = vmatprep.subr.bf16.mxu1 %v4377_v61  ;;  %v4417_v60 = vld [vmem:[%s4946_s10 + $0x1e8] sm:$0xff]  }
 0x822   : > { %v4418_v58 = vld [vmem:[%s4946_s10 + $0x128] sm:$0xff]  }
 0x823   : > { %v4419_v61 = vld [vmem:[%s4946_s10 + $0x1a8] sm:$0xff]  }
 0x824   : > { %3967 = vmatpush3.bf16.msra.mxu0 %v4378_v62  ;;  %3989 = vmatpush3.bf16.msra.mxu1 %v4379_v63  ;;  %v4420_v62 = vld [vmem:[%s4946_s10 + $0x170] sm:$0xff]  }
 0x825   : > { %3968 = vmatprep.subr.bf16.mxu0 %v4380_v0  ;;  %3990 = vmatprep.subr.bf16.mxu1 %v4381_v1  ;;  %v4421_v63 = vld [vmem:[%s4946_s10 + $0x1f0] sm:$0xff]  }
 0x826   : > { %v4422_v0 = vld [vmem:[%s4946_s10 + $0x130] sm:$0xff]  }
 0x827   : > { %v4423_v1 = vld [vmem:[%s4946_s10 + $0x1b0] sm:$0xff]  }
 0x828   : > { %3969 = vmatpush3.bf16.msra.mxu0 %v4382_v2  ;;  %3991 = vmatpush3.bf16.msra.mxu1 %v4383_v3  ;;  %v4424_v2 = vld [vmem:[%s4946_s10 + $0x178] sm:$0xff]  }
 0x829   : > { %3970 = vmatprep.subr.bf16.mxu0 %v4384_v4  ;;  %3992 = vmatprep.subr.bf16.mxu1 %v4385_v5  ;;  %v4425_v3 = vld [vmem:[%s4946_s10 + $0x1f8] sm:$0xff]  }
 0x82c   : > { %3971 = vmatpush3.bf16.msra.mxu0 %v4386_v52  ;;  %3993 = vmatpush3.bf16.msra.mxu1 %v4387_v6 }
 0x82d   : > { %3972 = vmatprep.subr.bf16.mxu0 %v4388_v7  ;;  %3994 = vmatprep.subr.bf16.mxu1 %v4389_v8 }
 0x830   : > { %3973 = vmatpush3.bf16.msra.mxu0 %v4390_v9  ;;  %3995 = vmatpush3.bf16.msra.mxu1 %v4391_v10  ;;  %v4426_v9 = vld [vmem:[%s4946_s10 + $0x138] sm:$0xff]  }
 0x831   : > { %3974 = vmatprep.subr.bf16.mxu0 %v4392_v11  ;;  %3996 = vmatprep.subr.bf16.mxu1 %v4393_v12  ;;  %v4427_v10 = vld [vmem:[%s4946_s10 + $0x1b8] sm:$0xff]  }
 0x834   : > { %3975 = vmatpush3.bf16.msra.mxu0 %v4394_v13  ;;  %3997 = vmatpush3.bf16.msra.mxu1 %v4395_v14 }
 0x835   : > { %4004 = vmatprep.subr.bf16.mxu0 %v4396_v15  ;;  %4026 = vmatprep.subr.bf16.mxu1 %v4397_v18 }
 0x8ca   : > { %v2441_v16 = vpop.f32.mrb[24].mxu0  ;;  %v2484_v17 = vpop.f32.mrb[36].mxu1 }
 0x8cb   : > { %v2443_v19 = vpop.f32.mrb[25].mxu0  ;;  %v2486_v20 = vpop.f32.mrb[37].mxu1  ;;  %v2579_v23 = vmax.f32 %v2441_v16, 0.0  ;;  %v2581_v24 = vmax.f32 %v2484_v17, 0.0 }
 0x8cc   : > { %v2445_v21 = vpop.f32.mrb[26].mxu0  ;;  %v2488_v22 = vpop.f32.mrb[38].mxu1  ;;  %v2580_v29 = vmax.f32 %v2443_v19, 0.0  ;;  %v2582_v30 = vmax.f32 %v2486_v20, 0.0 }
 0x8cd   : > { %v2587_v25 = vmax.f32 %v2445_v21, 0.0  ;;  %v2589_v26 = vmax.f32 %v2488_v22, 0.0  ;;  %v2447_v27 = vpop.f32.mrb[27].mxu0  ;;  %v2490_v28 = vpop.f32.mrb[39].mxu1 }
 0x8ce   : > { %v2588_v31 = vmax.f32 %v2447_v27, 0.0  ;;  %v2590_v32 = vmax.f32 %v2490_v28, 0.0 }
 0x8cf   : > { %v2595_v33 = vpack.c.bf16 %v2587_v25, %v2579_v23  ;;  %v2597_v34 = vpack.c.bf16 %v2589_v26, %v2581_v24 }
 0x8d0   : > { %v2596_v35 = vpack.c.bf16 %v2588_v31, %v2580_v29  ;;  %v2598_v36 = vpack.c.bf16 %v2590_v32, %v2582_v30 }
 0x8d2   : > { %3147 = vmatprep.mubr.bf16.mxu0 %v2596_v35  ;;  %3188 = vmatprep.mubr.bf16.mxu1 %v2598_v36 }
 0x8d3   : > { %3148 = vmatmul.mubr.bf16.vlgmr.msra.gmra.mrb[32].mxu0 %v2595_v33  ;;  %3189 = vmatmul.mubr.bf16.vlgmr.msra.gmra.mrb[44].mxu1 %v2597_v34 }
 0x8d4   : > { %4005 = vmatpush3.bf16.msra.mxu0 %v4398_v37  ;;  %4027 = vmatpush3.bf16.msra.mxu1 %v4399_v39 }
 0x8d5   : > { %4006 = vmatprep.subr.bf16.mxu0 %v4400_v41  ;;  %4028 = vmatprep.subr.bf16.mxu1 %v4401_v42 }
 0x8d8   : > { %4007 = vmatpush3.bf16.msra.mxu0 %v4402_v43  ;;  %4029 = vmatpush3.bf16.msra.mxu1 %v4403_v44 }
 0x8d9   : > { %4008 = vmatprep.subr.bf16.mxu0 %v4404_v45  ;;  %4030 = vmatprep.subr.bf16.mxu1 %v4405_v46 }
 0x8dc   : > { %4009 = vmatpush3.bf16.msra.mxu0 %v4406_v47  ;;  %4031 = vmatpush3.bf16.msra.mxu1 %v4407_v48 }
 0x8dd   : > { %4010 = vmatprep.subr.bf16.mxu0 %v4408_v49  ;;  %4032 = vmatprep.subr.bf16.mxu1 %v4409_v50 }
 0x8e0   : > { %4011 = vmatpush3.bf16.msra.mxu0 %v4410_v51  ;;  %4033 = vmatpush3.bf16.msra.mxu1 %v4411_v53 }
 0x8e1   : > { %4012 = vmatprep.subr.bf16.mxu0 %v4412_v54  ;;  %4034 = vmatprep.subr.bf16.mxu1 %v4413_v55 }
 0x8e4   : > { %4013 = vmatpush3.bf16.msra.mxu0 %v4414_v56  ;;  %4035 = vmatpush3.bf16.msra.mxu1 %v4415_v40 }
 0x8e5   : > { %4014 = vmatprep.subr.bf16.mxu0 %v4416_v59  ;;  %4036 = vmatprep.subr.bf16.mxu1 %v4417_v60 }
 0x8e8   : > { %4015 = vmatpush3.bf16.msra.mxu0 %v4418_v58  ;;  %4037 = vmatpush3.bf16.msra.mxu1 %v4419_v61 }
 0x8e9   : > { %4016 = vmatprep.subr.bf16.mxu0 %v4420_v62  ;;  %4038 = vmatprep.subr.bf16.mxu1 %v4421_v63 }
 0x8ea   : > { %v2527_v4 = vpop.f32.mrb[28].mxu0  ;;  %v2570_v5 = vpop.f32.mrb[40].mxu1 }
 0x8eb   : > { %v2529_v52 = vpop.f32.mrb[29].mxu0  ;;  %v2572_v6 = vpop.f32.mrb[41].mxu1  ;;  %v2583_v11 = vmax.f32 %v2527_v4, 0.0  ;;  %v2585_v12 = vmax.f32 %v2570_v5, 0.0 }
 0x8ec   : > { %v2531_v7 = vpop.f32.mrb[30].mxu0  ;;  %v2574_v8 = vpop.f32.mrb[42].mxu1  ;;  %4017 = vmatpush3.bf16.msra.mxu0 %v4422_v0  ;;  %4039 = vmatpush3.bf16.msra.mxu1 %v4423_v1  ;;  %v2584_v16 = vmax.f32 %v2529_v52, 0.0  ;;  %v2586_v17 = vmax.f32 %v2572_v6, 0.0 }
 0x8ed   : > { %v2591_v13 = vmax.f32 %v2531_v7, 0.0  ;;  %v2593_v14 = vmax.f32 %v2574_v8, 0.0  ;;  %v2533_v15 = vpop.f32.mrb[31].mxu0  ;;  %v2576_v18 = vpop.f32.mrb[43].mxu1  ;;  %4018 = vmatprep.subr.bf16.mxu0 %v4424_v2  ;;  %4040 = vmatprep.subr.bf16.mxu1 %v4425_v3  ;;  %v3899_v8 = vld [vmem:[%s650_s15] ss:$0 sm:$0xff] }
 0x8ee   : > { %v2592_v19 = vmax.f32 %v2533_v15, 0.0  ;;  %v2594_v20 = vmax.f32 %v2576_v18, 0.0 }
 0x8ef   : > { %v2599_v21 = vpack.c.bf16 %v2591_v13, %v2583_v11  ;;  %v2601_v22 = vpack.c.bf16 %v2593_v14, %v2585_v12  ;;  %v3900_v11 = vld [vmem:[%s653_s5] ss:$0 sm:$0xff]  ;;  %s5436_s5 = sld [smem:[#allocation22_spill]] (!%p3901_p7) }
 0x8f0   : > { %v2600_v23 = vpack.c.bf16 %v2592_v19, %v2584_v16  ;;  %v2602_v24 = vpack.c.bf16 %v2594_v20, %v2586_v17  ;;  %4019 = vmatpush3.bf16.msra.mxu0 %v4426_v9  ;;  %4041 = vmatpush3.bf16.msra.mxu1 %v4427_v10  ;;  %v4470_v17 = vld [vmem:[%s5433_s18] sm:$0xff] (!%p3901_p7)   ;;  %v4657_v19 = vmov (!%p3901_p7), 0.0|0.0   ;;  %v4659_v20 = vmov (!%p3901_p7), 0.0  }
 0x8f1   : > { %4195 = vmatprep.subr.bf16.mxu0 (!%p3901_p7), %v4657_v19  ;;  %4175 = vmatprep.subr.bf16.mxu1 (!%p3901_p7), %v4659_v20 }
 0x8f2   : > { %3229 = vmatprep.mubr.bf16.mxu0 %v2600_v23  ;;  %3270 = vmatprep.mubr.bf16.mxu1 %v2602_v24  ;;  %v4472_v23 = vld [vmem:[%s5434_s14 + $0x10] sm:$0xff] (!%p3901_p7)   ;;  %v4473_v24 = vld [vmem:[%s5434_s14 + $0x18] sm:$0xff] (!%p3901_p7)  }
 0x8f3   : > { %3230 = vmatmul.mubr.bf16.vlgmr.msra.gmra.mrb[36].mxu0 %v2599_v21  ;;  %3271 = vmatmul.mubr.bf16.vlgmr.msra.gmra.mrb[48].mxu1 %v2601_v22  ;;  %v3325_v21 = vld [vmem:[%s5435_s17] sm:$0x3] (!%p3901_p7)  ;;  %v4471_v22 = vld [vmem:[%s5434_s14 + $0x8] sm:$0xff] (!%p3901_p7)  }
 0x8f4   : > { %4172 = vmatprep.mubr.msk.f32.mxu0 (!%p3901_p7), %vm4658_vm5, %v4659_v20  ;;  %4176 = vmatpush3.bf16.msra.mxu1 (!%p3901_p7), %v4470_v17 }
 0x8f5   : > { %4191 = vmatprep.mubr.msk.bf16.mxu1 (!%p3901_p7), %vm4658_vm5, %v4659_v20  ;;  %4177 = vmatprep.subr.bf16.mxu1 (!%p3901_p7), %v4659_v20 }
 0x8f8   : > { %4178 = vmatpush3.bf16.msra.mxu1 (!%p3901_p7), %v4471_v22 }
 0x8f9   : > { %4179 = vmatprep.subr.bf16.mxu1 (!%p3901_p7), %v4659_v20 }
 0x8fc   : > { %4180 = vmatpush3.bf16.msra.mxu1 (!%p3901_p7), %v4472_v23 }
 0x8fd   : > { %4181 = vmatprep.subr.bf16.mxu1 (!%p3901_p7), %v4659_v20 }
 0x900   : > { %4182 = vmatpush3.bf16.msra.mxu1 (!%p3901_p7), %v4473_v24 }
 0x901   : > { %4183 = vmatprep.subr.bf16.mxu1 (!%p3901_p7), %v4659_v20 }
 0x9a6   : > { %v3976_v25 = vpop.f32.mrb[32].mxu0  ;;  %v3998_v26 = vpop.f32.mrb[44].mxu1 }
 0x9a7   : > { %v3977_v27 = vpop.f32.mrb[33].mxu0  ;;  %v3999_v28 = vpop.f32.mrb[45].mxu1 }
 0x9a8   : > { %v3978_v29 = vadd.f32 %v3977_v27, %v3976_v25  ;;  %v4000_v30 = vadd.f32 %v3999_v28, %v3998_v26  ;;  %v3979_v31 = vpop.f32.mrb[34].mxu0  ;;  %v4001_v32 = vpop.f32.mrb[46].mxu1  ;;  %v4474_v25 = vld [vmem:[%s5434_s14 + $0x20] sm:$0xff] (!%p3901_p7)   ;;  %v4475_v26 = vld [vmem:[%s5434_s14 + $0x28] sm:$0xff] (!%p3901_p7)   ;;  %v4476_v27 = vld [vmem:[%s5434_s14 + $0x30] sm:$0xff] (!%p3901_p7)  }
 0x9a9   : > { %v3980_v33 = vpop.f32.mrb[35].mxu0  ;;  %v4002_v34 = vpop.f32.mrb[47].mxu1  ;;  %4184 = vmatpush3.bf16.msra.mxu1 (!%p3901_p7), %v4474_v25  ;;  %v4477_v28 = vld [vmem:[%s5434_s14 + $0x38] sm:$0xff] (!%p3901_p7)  }
 0x9aa   : > { %v3150_v35 = vadd.f32 %v3978_v29, %v5203_v57  ;;  %v3981_v36 = vadd.f32 %v3980_v33, %v3979_v31  ;;  %v4003_v37 = vadd.f32 %v4002_v34, %v4001_v32  ;;  %4185 = vmatprep.subr.bf16.mxu1 (!%p3901_p7), %v4659_v20  ;;  %v3903_v32 = vld [vmem:[%s5436_s5] ss:$0 sm:$0xff] (!%p3901_p7) }
 0x9ac   : > { %v3191_v39 = vadd.f32 %v4000_v30, %v3150_v35  ;;  %v3153_v41 = vadd.f32 %v3981_v36, %v5205_v38 }
 0x9ad   : > { %4186 = vmatpush3.bf16.msra.mxu1 (!%p3901_p7), %v4475_v26 }
 0x9ae   : > { %v3194_v42 = vadd.f32 %v4003_v37, %v3153_v41  ;;  %4187 = vmatprep.subr.bf16.mxu1 (!%p3901_p7), %v4659_v20 }
 0x9b1   : > { %4188 = vmatpush3.bf16.msra.mxu1 (!%p3901_p7), %v4476_v27 }
 0x9b2   : > { %4189 = vmatprep.subr.bf16.mxu1 (!%p3901_p7), %v4659_v20 }
 0x9b5   : > { %4190 = vmatpush3.bf16.msra.mxu1 (!%p3901_p7), %v4477_v28 }
 0x9c6   : > { %v4020_v43 = vpop.f32.mrb[36].mxu0  ;;  %v4042_v44 = vpop.f32.mrb[48].mxu1 }
 0x9c7   : > { %v4021_v45 = vpop.f32.mrb[37].mxu0  ;;  %v4043_v46 = vpop.f32.mrb[49].mxu1 }
 0x9c8   : > { %v4022_v47 = vadd.f32 %v4021_v45, %v4020_v43  ;;  %v4044_v48 = vadd.f32 %v4043_v46, %v4042_v44  ;;  %v4023_v49 = vpop.f32.mrb[38].mxu0  ;;  %v4045_v50 = vpop.f32.mrb[50].mxu1 }
 0x9c9   : > { %v4024_v51 = vpop.f32.mrb[39].mxu0  ;;  %v4046_v53 = vpop.f32.mrb[51].mxu1 }
 0x9ca   : > { %v3232_v54 = vadd.f32 %v4022_v47, %v3191_v39  ;;  %v4025_v55 = vadd.f32 %v4024_v51, %v4023_v49  ;;  %v4047_v56 = vadd.f32 %v4046_v53, %v4045_v50 }
 0x9cc   : > { %v3235_v57 = vadd.f32 %v4025_v55, %v3194_v42  ;;  %v3273_v40 = vadd.f32 %v4044_v48, %v3232_v54 }
 0x9ce   : > { %3281 = vadd.xlane.f32.xlu1 %v3273_v40  ;;  %v3276_v59 = vadd.f32 %v4047_v56, %v3235_v57 }
 0x9d0   : > { %3283 = vadd.xlane.f32.xlu0 %v3276_v59 }
 0xa5b   : > { %v3282_v38 = vpop.xlane.xlu1 %3281 }
 0xa5c   : > { %v3285_v60 = vmul.f32 0.0078125, %v3282_v38 }
 0xa5d   : > { %v3284_v58 = vpop.xlane.xlu0 %3283 }
 0xa5e   : > { %v3287_v61 = vsub.f32 %v3273_v40, %v3285_v60  ;;  %v3286_v62 = vmul.f32 0.0078125, %v3284_v58 }
 0xa60   : > { %v3288_v63 = vsub.f32 %v3276_v59, %v3286_v62  ;;  %v3289_v0 = vmul.f32 %v3287_v61, %v3287_v61 }
 0xa62   : > { %3291 = vadd.xlane.f32.xlu1 %v3289_v0  ;;  %v3290_v1 = vmul.f32 %v3288_v63, %v3288_v63 }
 0xa64   : > { %3293 = vadd.xlane.f32.xlu0 %v3290_v1 }
 0xaef   : > { %v3292_v2 = vpop.xlane.xlu1 %3291 }
 0xaf0   : > { %v3295_v3 = vmul.f32 0.0078125, %v3292_v2 }
 0xaf1   : > { %v3294_v4 = vpop.xlane.xlu0 %3293 }
 0xaf2   : > { %v3297_v5 = vadd.f32 1e-06, %v3295_v3  ;;  %v3296_v52 = vmul.f32 0.0078125, %v3294_v4 }
 0xaf4   : > { %4464 = vrsqrt.f32 %v3297_v5  ;;  %v3298_v6 = vadd.f32 1e-06, %v3296_v52 }
 0xaf6   : > { %4466 = vrsqrt.f32 %v3298_v6 }
 0xafe   : > { %v4465_v7 = vpop.eup %4464 }
 0xaff   : > { %v3301_v9 = vmul.f32 %v4465_v7, %v3287_v61 }
 0xb00   : > { %v4467_v10 = vpop.eup %4466 }
 0xb01   : > { %v3309_v12 = vmul.f32 %v3899_v8, %v3301_v9  ;;  %v3302_v13 = vmul.f32 %v4467_v10, %v3288_v63  ;;  %3324 = sbr.rel (%p3901_p7) target bundleno = 3571 (0xdf3), region = 100 }
 0xb03   : > { %v3317_v14 = vadd.f32 %v3900_v11, %v3309_v12  ;;  %v3310_v15 = vmul.f32 %v3899_v8, %v3302_v13 }
 0xb05   : > { %3319 = vst [vmem:[#allocation2] sm:$0xff] %v3317_v14  ;;  %v3318_v18 = vadd.f32 %v3900_v11, %v3310_v15 }
 0xb07   : > { %3320 = vst [vmem:[#allocation2 + $0x8] sm:$0xff] %v3318_v18  ;;  %v4196_v16 = vpack.c.bf16 (!%p3901_p7), %v3318_v18, %v3317_v14 }
 0xb09   : > { %4197 = vmatpush3.bf16.msra.mxu0 %v4196_v16 }
 0xb0c   : > { %4173 = vmatmul.mubr.msk.f32.vlgmr.msra.gmra.mrb[0].mxu0 %vm1396_vm4, %v3325_v21 }
 0xbdf   : > { %v3395_v29 = vpop.f32.mrb[0].mxu0 }
 0xbe0   : > { %v3399_v30 = vpack.c.bf16 %v3395_v29, %v3395_v29  ;;  %v4174_v31 = vpop.f32.mrb[1].mxu0 }
 0xbe2   : > { %4192 = vmatmul.mubr.bf16.vlgmr.msra.gmra.mrb[0].mxu1 %v3399_v30 }
 0xcb5   : > { %v3505_v33 = vpop.f32.mrb[0].mxu1 }
 0xcb6   : > { %v3506_v34 = vadd.f32 %v3903_v32, %v3505_v33  ;;  %v4193_v35 = vpop.f32.mrb[1].mxu1 }
 0xcb7   : > { %v3508_v36 = vpop.f32.mrb[2].mxu1 }
 0xcb8   : > { %v4194_v37 = vpop.f32.mrb[3].mxu1  ;;  %v3512_v39 = vsel %vm3511_vm6, %v3506_v34, -inf }
 0xcb9   : > { %3513 = vmax.xlane.f32.xlu0 %v3512_v39 }
 0xd46   : > { %v3514_v41 = vpop.xlane.xlu0 %3513 }
 0xd47   : > { %v3515_v42 = vsub.f32 %v3506_v34, %v3514_v41 }
 0xd49   : > { %v3516_v43 = vmul.f32 1.442695, %v3515_v42 }
 0xd4b   : > { %4478 = vpow2.f32 %v3516_v43 }
 0xd55   : > { %v4479_v44 = vpop.eup %4478 }
 0xd56   : > { %v3518_v45 = vsel %vm3511_vm6, %v4479_v44, 0.0 }
 0xd57   : > { %3519 = vadd.xlane.f32.xlu0 %v3518_v45 }
 0xde4   : > { %v3520_v46 = vpop.xlane.xlu0 %3519 }
 0xde5   : > { %4480 = vrcp.f32 %v3520_v46 }
 0xdef   : > { %v4481_v47 = vpop.eup %4480 }
 0xdf0   : > { %v3522_v48 = vmul.f32 %v4481_v47, %v4479_v44 }
 0xdf2   : > { %3523 = vst [vmem:[#allocation9] sm:$0x3] %v3522_v48 }
 0xdf3 PF: > { %p4222_p12 = scmp.eq.s32.totalorder %s4760_s22, 1  ;;  %s4660_s3 = smov [#allocation9]  }
 0xdf4   : > { %s3531_s17 = sshll.u32 %s4660_s3, 4  ;;  %s3532_s17 = int_to_ptr.vmem [resolvable:$true] %s3531_s17 }
 0xdf5   : > { %s4572_s29 = scalar_lea.vmem %s3532_s17, 32  ;;  %p4579_p6 = scmp.lt.s32.totalorder %s3532_s17, %s3532_s17 }
 0xdf6   : > { %p4573_p2 = scmp.ne.s32.totalorder %s3532_s17, %s4572_s29  ;;  %p4580_p4 = scmp.lt.s32.totalorder %s4572_s29, %s4572_s29 }
 0xdf8   : > { %p4574_p3 = pnand %p4573_p2, %p4222_p12  ;;  %p4581_p1 = por %p4580_p4, %p4579_p6 }
 0xdfa   : > { %p4575_p5 = pneg %p4574_p3 }
 0xdfc   : > { %p4582_p11 = pnand %p4581_p1, %p4575_p5 }
 0xdfe   : > { %4585 = shalt.err (!%p4582_p11)
}
 0xdff   : > { %s5437_s26 = sld [smem:[#allocation23_spill]] }
 0xe05   : > { %s4586_s16 = scalar_lea.hbm %s5437_s26, 32 }
 0xe06   : > { %p4587_p13 = scmp.ne.s32.totalorder %s5437_s26, %s4586_s16  ;;  %p4592_p8 = scmp.lt.u32.totalorder %s4586_s16, %s5437_s26 }
 0xe08   : > { %p4588_p10 = pnand %p4587_p13, %p4222_p12 }
 0xe0a   : > { %p4589_p9 = pneg %p4588_p10 }
 0xe0c   : > { %p4594_p0 = pnand %p4592_p8, %p4589_p9 }
 0xe0e   : > { %4597 = shalt.err (!%p4594_p0)
}
 0xe0f   : > { %4208 = dma.vmem_to_hbm [thread:$0]  (%p4222_p12), %s3532_s17, 32, %s5437_s26, [#allocation5]  }
 0xe10   : > { %4623 = dma.done.wait (%p4222_p12), [#allocation5], 32  }
 0xe11   : > { %4625 = vsyncadd (%p4222_p12), [#allocation5], 4294967264 }
 0xe12 PF: > { %s5438_s21 = sld [smem:[#allocation14_spill]]  ;;  %s5439_s28 = sld [smem:[#allocation13_spill]] }
 0xe13   : > { %s5440_s20 = sld [smem:[#allocation15_spill]]  ;;  %s5441_s18 = smov %s4632_s19 }
 0xe18   : > { %p29_p7 = scmp.ge.s32.totalorder %s5438_s21, 4   ;;  %s5442_s19 = smov %s5439_s28 }
 0xe1a   :  { %31 = sbr.rel (!%p29_p7) target bundleno = 15 (0xf), region = 164 }
 0xe21   :  { %3544 = vsyncpa [#allocation4], 1 }
 0xe22   :  { %3546 = vsyncpa [#allocation4 + $0x1], 1 }
 0xe23   :  { %3547 = vsyncpa [#allocation7], 1 }
 0xe24   :  { %3549 = vsyncpa [#allocation7 + $0x1], 1 }
 0xe25   :  { %3550 = vsyncpa [#allocation5], 1 }
 0xe26   :  { %3552 = vsyncpa [#allocation5 + $0x1], 1 }

</bundles_post_ra>
